<compile_context>
chip_gen: v6e
topology: v6e:2x2x1
jax: 0.10.0
libtpu: 0.0.40
codegen_flags: <defaults>
</compile_context>

<pallas_src>
import functools

import jax
import jax.numpy as jnp
import numpy as np
from jax import lax
from jax.experimental import pallas as pl
from jax.experimental.pallas import tpu as pltpu

EPS = 1e-5
# f32 + HIGHEST keeps us comfortably inside the 2e-3 tolerance; for large
# production channel counts, bf16 activations with f32 accumulation would be
# ~3x cheaper per matmul on v6e/v7x.
PREC = lax.Precision.HIGHEST

# Scoped-VMEM budget: tiles here are tiny; for real feature maps choose
# block_cols so that (K + Cout) * block_cols * 4B * 2(double-buffer) stays well
# under ~16-24 MiB (v7x has only 64 MiB physical VMEM).
VMEM_LIMIT = 32 * 1024 * 1024


# ----------------------------- in-kernel helpers -----------------------------
def _activate(z, act):
    if act is None:
        return z
    if act == "mish":
        # x * tanh(softplus(x)); softplus threshold=20 like torch.
        sp = jnp.where(z > 20.0, z, jnp.log1p(jnp.exp(jnp.minimum(z, 20.0))))
        return z * jnp.tanh(sp)
    if act == "sigmoid":
        return jax.nn.sigmoid(z)
    raise ValueError(act)


# --------------------------------- kernels -----------------------------------
def _conv_stats_kernel(x_ref, sc_ref, sh_ref, w_ref, b_ref,
                       y_ref, sum_ref, ssq_ref,
                       *, pre_act, block_cols, n_valid, n_total):
    """Per tile: z = pre_act(x*sc+sh); y = W @ z + b; accumulate per-channel
    sum / sumsq across the grid (VMEM-resident accumulator outputs)."""
    i = pl.program_id(0)

    @pl.when(i == 0)
    def _():
        sum_ref[...] = jnp.zeros_like(sum_ref)
        ssq_ref[...] = jnp.zeros_like(ssq_ref)

    # Lazily apply previous layer's BN + activation (identity for raw inputs).
    z = _activate(x_ref[...] * sc_ref[...] + sh_ref[...], pre_act)
    y = jnp.dot(w_ref[...], z,
                preferred_element_type=jnp.float32, precision=PREC) + b_ref[...]
    y_ref[...] = y

    if n_valid != n_total:  # mask padded spatial columns out of the stats
        col = i * block_cols + lax.broadcasted_iota(jnp.int32, y.shape, 1)
        y = jnp.where(col < n_valid, y, 0.0)
    sum_ref[...] += jnp.sum(y, axis=1, keepdims=True)
    ssq_ref[...] += jnp.sum(y * y, axis=1, keepdims=True)


def _mul_conv_stats_kernel(x_ref, scx_ref, shx_ref, s_ref, scs_ref, shs_ref,
                           w_ref, b_ref, y_ref, sum_ref, ssq_ref,
                           *, act_x, act_s, block_cols, n_valid, n_total):
    """SAM path final conv: y = W @ (mish(bn(x)) * sigmoid(bn(sam))) + b,
    fused with the cross-tile stats accumulation."""
    i = pl.program_id(0)

    @pl.when(i == 0)
    def _():
        sum_ref[...] = jnp.zeros_like(sum_ref)
        ssq_ref[...] = jnp.zeros_like(ssq_ref)

    xz = _activate(x_ref[...] * scx_ref[...] + shx_ref[...], act_x)
    sz = _activate(s_ref[...] * scs_ref[...] + shs_ref[...], act_s)
    y = jnp.dot(w_ref[...], xz * sz,
                preferred_element_type=jnp.float32, precision=PREC) + b_ref[...]
    y_ref[...] = y

    if n_valid != n_total:
        col = i * block_cols + lax.broadcasted_iota(jnp.int32, y.shape, 1)
        y = jnp.where(col < n_valid, y, 0.0)
    sum_ref[...] += jnp.sum(y, axis=1, keepdims=True)
    ssq_ref[...] += jnp.sum(y * y, axis=1, keepdims=True)


def _norm_act_kernel(y_ref, sc_ref, sh_ref, o_ref, *, act):
    o_ref[...] = _activate(y_ref[...] * sc_ref[...] + sh_ref[...], act)


# ------------------------------- pallas glue ----------------------------------
def _tile_spec(c, bc):
    return pl.BlockSpec((c, bc), lambda i: (0, i))


def _vec_spec(c):
    return pl.BlockSpec((c, 1), lambda i: (0, 0))


def _mat_spec(r, c):
    return pl.BlockSpec((r, c), lambda i: (0, 0))


def conv_stats(x, sc, sh, w, b, *, pre_act, block_cols, n_valid):
    k, rp = x.shape
    cout = w.shape[0]
    grid = (rp // block_cols,)
    kernel = functools.partial(_conv_stats_kernel, pre_act=pre_act,
                               block_cols=block_cols, n_valid=n_valid,
                               n_total=rp)
    return pl.pallas_call(
        kernel,
        grid=grid,
        in_specs=[_tile_spec(k, block_cols), _vec_spec(k), _vec_spec(k),
                  _mat_spec(cout, k), _vec_spec(cout)],
        out_specs=[_tile_spec(cout, block_cols), _vec_spec(cout), _vec_spec(cout)],
        out_shape=[jax.ShapeDtypeStruct((cout, rp), jnp.float32),
                   jax.ShapeDtypeStruct((cout, 1), jnp.float32),
                   jax.ShapeDtypeStruct((cout, 1), jnp.float32)],
        compiler_params=pltpu.CompilerParams(
            dimension_semantics=("arbitrary",),   # cross-tile stats accumulator
            vmem_limit_bytes=VMEM_LIMIT),
    )(x, sc, sh, w, b)


def mul_conv_stats(x, scx, shx, s, scs, shs, w, b, *, act_x, act_s,
                   block_cols, n_valid):
    k, rp = x.shape
    cout = w.shape[0]
    grid = (rp // block_cols,)
    kernel = functools.partial(_mul_conv_stats_kernel, act_x=act_x, act_s=act_s,
                               block_cols=block_cols, n_valid=n_valid,
                               n_total=rp)
    return pl.pallas_call(
        kernel,
        grid=grid,
        in_specs=[_tile_spec(k, block_cols), _vec_spec(k), _vec_spec(k),
                  _tile_spec(k, block_cols), _vec_spec(k), _vec_spec(k),
                  _mat_spec(cout, k), _vec_spec(cout)],
        out_specs=[_tile_spec(cout, block_cols), _vec_spec(cout), _vec_spec(cout)],
        out_shape=[jax.ShapeDtypeStruct((cout, rp), jnp.float32),
                   jax.ShapeDtypeStruct((cout, 1), jnp.float32),
                   jax.ShapeDtypeStruct((cout, 1), jnp.float32)],
        compiler_params=pltpu.CompilerParams(
            dimension_semantics=("arbitrary",),
            vmem_limit_bytes=VMEM_LIMIT),
    )(x, scx, shx, s, scs, shs, w, b)


def norm_act(y, sc, sh, act, *, block_cols):
    c, rp = y.shape
    grid = (rp // block_cols,)
    return pl.pallas_call(
        functools.partial(_norm_act_kernel, act=act),
        grid=grid,
        in_specs=[_tile_spec(c, block_cols), _vec_spec(c), _vec_spec(c)],
        out_specs=_tile_spec(c, block_cols),
        out_shape=jax.ShapeDtypeStruct((c, rp), jnp.float32),
        compiler_params=pltpu.CompilerParams(
            dimension_semantics=("parallel",),    # independent tiles -> megacore
            vmem_limit_bytes=VMEM_LIMIT),
    )(y, sc, sh)


# ------------------------------ host-side helpers ------------------------------
def _finalize_stats(s, q, gamma, beta, n):
    """Per-channel BN finalize (tiny, done in XLA): sum/sumsq -> scale/shift."""
    mean = s / n
    var = q / n - mean * mean          # biased variance (BatchNorm training)
    inv = lax.rsqrt(var + EPS)
    scale = gamma * inv
    shift = beta - mean * scale
    return scale, shift


def _im2col_cmajor(x_cm, n, h, w, rp):
    """(C, N*H*W[, padded]) activated feature map -> (9*C, rp) im2col slab for a
    3x3 / pad=1 conv.  Built once in XLA so the Pallas kernel does a single
    K = 9*C matmul per tile with no in-kernel relayouts."""
    c = x_cm.shape[0]
    r = n * h * w
    x_img = x_cm[:, :r].reshape(c, n, h, w)
    xp = jnp.pad(x_img, ((0, 0), (0, 0), (1, 1), (1, 1)))
    taps = [xp[:, :, dy:dy + h, dx:dx + w] for dy in range(3) for dx in range(3)]
    slab = jnp.stack(taps, axis=0).reshape(9 * c, r)
    if rp > r:
        slab = jnp.pad(slab, ((0, 0), (0, rp - r)))
    return slab


# --------------------------------- forward ------------------------------------
def panet_block(x_nchw, params, sam_enabled=False, block_cols=512):
    assert block_cols % 128 == 0
    n, c, h, w = x_nchw.shape
    r = n * h * w
    block_cols = min(block_cols, ((r + 127) // 128) * 128)
    rp = ((r + block_cols - 1) // block_cols) * block_cols

    # NCHW -> channel-major (C, N*H*W): spatial on the 128-lane axis.
    x = jnp.transpose(x_nchw, (1, 0, 2, 3)).reshape(c, r)
    if rp > r:
        x = jnp.pad(x, ((0, 0), (0, rp - r)))

    ones = lambda k: jnp.ones((k, 1), jnp.float32)
    zeros = lambda k: jnp.zeros((k, 1), jnp.float32)

    def conv_layer(inp, sc, sh, pre_act, p):
        w2 = p["w"].reshape(p["w"].shape[0], -1)       # (Cout, K)
        y, s, q = conv_stats(inp, sc, sh, w2, p["b"], pre_act=pre_act,
                             block_cols=block_cols, n_valid=r)
        scale, shift = _finalize_stats(s, q, p["g"], p["be"], r)
        return y, scale, shift

    # L0: 1x1 on the raw input (no pre-normalization).
    y0, sc0, sh0 = conv_layer(x, ones(c), zeros(c), None, params["convs"][0])
    # L1: 3x3 -- explicit normalize pass (zero-pad applies to activated map),
    #            then one K=9*Cin matmul per tile on the im2col slab.
    x0 = norm_act(y0, sc0, sh0, "mish", block_cols=block_cols)
    slab0 = _im2col_cmajor(x0, n, h, w, rp)
    y1, sc1, sh1 = conv_layer(slab0, ones(slab0.shape[0]), zeros(slab0.shape[0]),
                              None, params["convs"][1])
    # L2: 1x1 -- BN+Mish of L1 fused into this conv's kernel (lazy norm).
    y2, sc2, sh2 = conv_layer(y1, sc1, sh1, "mish", params["convs"][2])
    # L3: 3x3
    x2 = norm_act(y2, sc2, sh2, "mish", block_cols=block_cols)
    slab2 = _im2col_cmajor(x2, n, h, w, rp)
    y3, sc3, sh3 = conv_layer(slab2, ones(slab2.shape[0]), zeros(slab2.shape[0]),
                              None, params["convs"][3])

    if sam_enabled:
        # sam = sigmoid(bn(conv1x1(x3)));  out_conv consumes x3 * sam, all from
        # the raw y3 / ysam with both normalizations fused into the kernel.
        ysam, scs, shs = conv_layer(y3, sc3, sh3, "mish", params["sam"])
        pc = params["conv"]
        wc = pc["w"].reshape(pc["w"].shape[0], -1)
        yc, s, q = mul_conv_stats(y3, sc3, sh3, ysam, scs, shs, wc, pc["b"],
                                  act_x="mish", act_s="sigmoid",
                                  block_cols=block_cols, n_valid=r)
        scc, shc = _finalize_stats(s, q, pc["g"], pc["be"], r)
        out_cm = norm_act(yc, scc, shc, "mish", block_cols=block_cols)
    else:
        # L4: 1x1 with fused BN+Mish of L3.
        y4, sc4, sh4 = conv_layer(y3, sc3, sh3, "mish", params["convs"][4])
        out_cm = norm_act(y4, sc4, sh4, "mish", block_cols=block_cols)

    cout = out_cm.shape[0]
    out = out_cm[:, :r].reshape(cout, n, h, w)
    return jnp.transpose(out, (1, 0, 2, 3))           # back to NCHW


# ------------------------------ pure-JAX reference ----------------------------
def _ref_conv_bn_act(x, p, act, k):
    if k == 1:
        w_hwio = jnp.transpose(p["w"], (1, 0))[None, None, :, :]   # (1,1,Cin,Cout)
        pad = 0
    else:
        w_hwio = jnp.transpose(p["w"], (1, 2, 3, 0))               # (3,3,Cin,Cout)
        pad = 1
    y = lax.conv_general_dilated(x, w_hwio, (1, 1), [(pad, pad), (pad, pad)],
                                 dimension_numbers=("NCHW", "HWIO", "NCHW"),
                                 precision=PREC)
    y = y + p["b"].reshape(1, -1, 1, 1)
    mean = y.mean(axis=(0, 2, 3), keepdims=True)
    var = ((y - mean) ** 2).mean(axis=(0, 2, 3), keepdims=True)
    z = (y - mean) * lax.rsqrt(var + EPS) * p["g"].reshape(1, -1, 1, 1) \
        + p["be"].reshape(1, -1, 1, 1)
    return _activate(z, act)


def panet_block_ref(x, params, sam_enabled=False):
    x = _ref_conv_bn_act(x, params["convs"][0], "mish", 1)
    x = _ref_conv_bn_act(x, params["convs"][1], "mish", 3)
    x = _ref_conv_bn_act(x, params["convs"][2], "mish", 1)
    x = _ref_conv_bn_act(x, params["convs"][3], "mish", 3)
    if sam_enabled:
        sam = _ref_conv_bn_act(x, params["sam"], "sigmoid", 1)
        x = _ref_conv_bn_act(x * sam, params["conv"], "mish", 1)
    else:
        x = _ref_conv_bn_act(x, params["convs"][4], "mish", 1)
    return x


# --------------------------------- parameters ---------------------------------
def make_conv_params(key, cin, cout, k):
    kw, kb, kg, ke = jax.random.split(key, 4)
    if k == 1:
        w = 0.3 * jax.random.normal(kw, (cout, cin), jnp.float32)
    else:
        w = 0.1 * jax.random.normal(kw, (cout, 3, 3, cin), jnp.float32)
    return dict(
        w=w,
        b=0.1 * jax.random.normal(kb, (cout, 1), jnp.float32),        # conv bias
        g=1.0 + 0.1 * jax.random.normal(kg, (cout, 1), jnp.float32),  # BN gamma
        be=0.05 * jax.random.normal(ke, (cout, 1), jnp.float32),      # BN beta
    )


if __name__ == "__main__":
    in_c, N, H, W = 8, 2, 16, 16
    half = in_c // 2

    key = jax.random.PRNGKey(0)
    kx, *ks = jax.random.split(key, 9)

    x = jax.random.normal(kx, (N, in_c, H, W), jnp.float32)   # NCHW like PyTorch

    params = dict(
        convs=[make_conv_params(ks[0], in_c, half, 1),
               make_conv_params(ks[1], half, in_c, 3),
               make_conv_params(ks[2], in_c, half, 1),
               make_conv_params(ks[3], half, in_c, 3),
               make_conv_params(ks[4], in_c, half, 1)],
        sam=make_conv_params(ks[5], in_c, in_c, 1),
        conv=make_conv_params(ks[6], in_c, half, 1),
    )

    # block_cols=128 -> 4 grid steps at this size, exercising the pipelined
    # grid and the cross-tile BN accumulator.
    fwd = jax.jit(lambda xx, pp: panet_block(xx, pp, sam_enabled=False,
                                             block_cols=128))
    fwd_sam = jax.jit(lambda xx, pp: panet_block(xx, pp, sam_enabled=True,
                                                 block_cols=128))

    out = jax.block_until_ready(fwd(x, params))
    out_sam = jax.block_until_ready(fwd_sam(x, params))

    ref = panet_block_ref(x, params, sam_enabled=False)
    ref_sam = panet_block_ref(x, params, sam_enabled=True)

    np.testing.assert_allclose(np.asarray(out), np.asarray(ref),
                               rtol=2e-3, atol=2e-3)
    np.testing.assert_allclose(np.asarray(out_sam), np.asarray(ref_sam),
                               rtol=2e-3, atol=2e-3)

    print("KERNEL_OK")
</pallas_src>

<mosaic_0001>
module attributes {stable_mosaic.version = 11 : i64} {
  func.func @_norm_act_kernel(%arg0: i32, %arg1: memref<4x128xf32, #tpu.memory_space<vmem>>, %arg2: memref<4x1xf32, #tpu.memory_space<vmem>>, %arg3: memref<4x1xf32, #tpu.memory_space<vmem>>, %arg4: memref<4x128xf32, #tpu.memory_space<vmem>>) attributes {dimension_semantics = [#tpu.dimension_semantics<parallel>], iteration_bounds = array<i64: 4>, scalar_prefetch = 0 : i64, scratch_operands = 0 : i64, tpu.core_type = #tpu.core_type<tc>, window_params = [{transform_indices = @transform_0, window_bounds = array<i64: 4, 128>}, {pipeline_mode = #tpu.pipeline_mode<synchronous>, transform_indices = @transform_1, window_bounds = array<i64: 4, 1>}, {pipeline_mode = #tpu.pipeline_mode<synchronous>, transform_indices = @transform_2, window_bounds = array<i64: 4, 1>}, {transform_indices = @transform_3, window_bounds = array<i64: 4, 128>}]} {
    %c0 = arith.constant 0 : index
    %c0_0 = arith.constant 0 : index
    %0 = vector.load %arg1[%c0, %c0_0] : memref<4x128xf32, #tpu.memory_space<vmem>>, vector<4x128xf32>
    %c0_1 = arith.constant 0 : index
    %c0_2 = arith.constant 0 : index
    %1 = vector.load %arg2[%c0_1, %c0_2] : memref<4x1xf32, #tpu.memory_space<vmem>>, vector<4x1xf32>
    %2 = vector.broadcast %1 : vector<4x1xf32> to vector<4x128xf32>
    %3 = arith.mulf %0, %2 : vector<4x128xf32>
    %c0_3 = arith.constant 0 : index
    %c0_4 = arith.constant 0 : index
    %4 = vector.load %arg3[%c0_3, %c0_4] : memref<4x1xf32, #tpu.memory_space<vmem>>, vector<4x1xf32>
    %5 = vector.broadcast %4 : vector<4x1xf32> to vector<4x128xf32>
    %6 = arith.addf %3, %5 : vector<4x128xf32>
    %cst = arith.constant 2.000000e+01 : f32
    %7 = vector.broadcast %cst : f32 to vector<4x128xf32>
    %8 = arith.cmpf ogt, %6, %7 : vector<4x128xf32>
    %cst_5 = arith.constant 2.000000e+01 : f32
    %9 = vector.broadcast %cst_5 : f32 to vector<4x128xf32>
    %10 = arith.minimumf %6, %9 : vector<4x128xf32>
    %11 = math.exp %10 : vector<4x128xf32>
    %12 = math.log1p %11 : vector<4x128xf32>
    %13 = arith.select %8, %6, %12 : vector<4x128xi1>, vector<4x128xf32>
    %14 = math.tanh %13 : vector<4x128xf32>
    %15 = arith.mulf %6, %14 : vector<4x128xf32>
    %c0_6 = arith.constant 0 : index
    %c0_7 = arith.constant 0 : index
    %16 = vector.load %arg4[%c0_6, %c0_7] : memref<4x128xf32, #tpu.memory_space<vmem>>, vector<4x128xf32>
    tpu.vector_store %arg4[%c0_6, %c0_7], %15 {strides = array<i32>} : memref<4x128xf32, #tpu.memory_space<vmem>>, vector<4x128xf32>,
    return
  }
  func.func @transform_0(%arg0: i32) -> (i32, i32) {
    %c0_i32 = arith.constant 0 : i32
    %c0_i32_0 = arith.constant 0 : i32
    return %c0_i32, %arg0 : i32, i32
  }
  func.func @transform_1(%arg0: i32) -> (i32, i32) {
    %c0_i32 = arith.constant 0 : i32
    %c0_i32_0 = arith.constant 0 : i32
    %c0_i32_1 = arith.constant 0 : i32
    return %c0_i32, %c0_i32_0 : i32, i32
  }
  func.func @transform_2(%arg0: i32) -> (i32, i32) {
    %c0_i32 = arith.constant 0 : i32
    %c0_i32_0 = arith.constant 0 : i32
    %c0_i32_1 = arith.constant 0 : i32
    return %c0_i32, %c0_i32_0 : i32, i32
  }
  func.func @transform_3(%arg0: i32) -> (i32, i32) {
    %c0_i32 = arith.constant 0 : i32
    %c0_i32_0 = arith.constant 0 : i32
    return %c0_i32, %arg0 : i32, i32
  }
}

module attributes {stable_mosaic.version = 11 : i64} {
  func.func @_conv_stats_kernel(%arg0: i32, %arg1: memref<8x128xf32, #tpu.memory_space<vmem>>, %arg2: memref<8x1xf32, #tpu.memory_space<vmem>>, %arg3: memref<8x1xf32, #tpu.memory_space<vmem>>, %arg4: memref<4x8xf32, #tpu.memory_space<vmem>>, %arg5: memref<4x1xf32, #tpu.memory_space<vmem>>, %arg6: memref<4x128xf32, #tpu.memory_space<vmem>>, %arg7: memref<4x1xf32, #tpu.memory_space<vmem>>, %arg8: memref<4x1xf32, #tpu.memory_space<vmem>>) attributes {dimension_semantics = [#tpu.dimension_semantics<arbitrary>], iteration_bounds = array<i64: 4>, scalar_prefetch = 0 : i64, scratch_operands = 0 : i64, tpu.core_type = #tpu.core_type<tc>, window_params = [{transform_indices = @transform_0, window_bounds = array<i64: 8, 128>}, {pipeline_mode = #tpu.pipeline_mode<synchronous>, transform_indices = @transform_1, window_bounds = array<i64: 8, 1>}, {pipeline_mode = #tpu.pipeline_mode<synchronous>, transform_indices = @transform_2, window_bounds = array<i64: 8, 1>}, {pipeline_mode = #tpu.pipeline_mode<synchronous>, transform_indices = @transform_3, window_bounds = array<i64: 4, 8>}, {pipeline_mode = #tpu.pipeline_mode<synchronous>, transform_indices = @transform_4, window_bounds = array<i64: 4, 1>}, {transform_indices = @transform_5, window_bounds = array<i64: 4, 128>}, {pipeline_mode = #tpu.pipeline_mode<synchronous>, transform_indices = @transform_6, window_bounds = array<i64: 4, 1>}, {pipeline_mode = #tpu.pipeline_mode<synchronous>, transform_indices = @transform_7, window_bounds = array<i64: 4, 1>}]} {
    %c0_i32 = arith.constant 0 : i32
    %0 = arith.cmpi eq, %arg0, %c0_i32 : i32
    %1 = arith.extui %0 : i1 to i32
    %c0_i32_0 = arith.constant 0 : i32
    %2 = arith.cmpi ne, %1, %c0_i32_0 : i32
    scf.if %2 {
      %cst_22 = arith.constant 0.000000e+00 : f32
      %27 = vector.broadcast %cst_22 : f32 to vector<4x1xf32>
      %c0_23 = arith.constant 0 : index
      %c0_24 = arith.constant 0 : index
      %28 = vector.load %arg7[%c0_23, %c0_24] : memref<4x1xf32, #tpu.memory_space<vmem>>, vector<4x1xf32>
      tpu.vector_store %arg7[%c0_23, %c0_24], %27 {strides = array<i32>} : memref<4x1xf32, #tpu.memory_space<vmem>>, vector<4x1xf32>,
      %cst_25 = arith.constant 0.000000e+00 : f32
      %29 = vector.broadcast %cst_25 : f32 to vector<4x1xf32>
      %c0_26 = arith.constant 0 : index
      %c0_27 = arith.constant 0 : index
      %30 = vector.load %arg8[%c0_26, %c0_27] : memref<4x1xf32, #tpu.memory_space<vmem>>, vector<4x1xf32>
      tpu.vector_store %arg8[%c0_26, %c0_27], %29 {strides = array<i32>} : memref<4x1xf32, #tpu.memory_space<vmem>>, vector<4x1xf32>,
    } else {
    }
    %c0 = arith.constant 0 : index
    %c0_1 = arith.constant 0 : index
    %3 = vector.load %arg1[%c0, %c0_1] : memref<8x128xf32, #tpu.memory_space<vmem>>, vector<8x128xf32>
    %c0_2 = arith.constant 0 : index
    %c0_3 = arith.constant 0 : index
    %4 = vector.load %arg2[%c0_2, %c0_3] : memref<8x1xf32, #tpu.memory_space<vmem>>, vector<8x1xf32>
    %5 = vector.broadcast %4 : vector<8x1xf32> to vector<8x128xf32>
    %6 = arith.mulf %3, %5 : vector<8x128xf32>
    %c0_4 = arith.constant 0 : index
    %c0_5 = arith.constant 0 : index
    %7 = vector.load %arg3[%c0_4, %c0_5] : memref<8x1xf32, #tpu.memory_space<vmem>>, vector<8x1xf32>
    %8 = vector.broadcast %7 : vector<8x1xf32> to vector<8x128xf32>
    %9 = arith.addf %6, %8 : vector<8x128xf32>
    %c0_6 = arith.constant 0 : index
    %c0_7 = arith.constant 0 : index
    %10 = vector.load %arg4[%c0_6, %c0_7] : memref<4x8xf32, #tpu.memory_space<vmem>>, vector<4x8xf32>
    %cst = arith.constant dense<0.000000e+00> : vector<4x128xf32>
    %11 = tpu.matmul %10, %9, %cst {dimension_numbers = #tpu.dot_dimension_numbers<[1], [0], [0], [1], [0, 0, 1, 1], [], []>, precision = #tpu.contract_precision<fp32>} : vector<4x8xf32>, vector<8x128xf32>, vector<4x128xf32> -> vector<4x128xf32>
    %c0_8 = arith.constant 0 : index
    %c0_9 = arith.constant 0 : index
    %12 = vector.load %arg5[%c0_8, %c0_9] : memref<4x1xf32, #tpu.memory_space<vmem>>, vector<4x1xf32>
    %13 = vector.broadcast %12 : vector<4x1xf32> to vector<4x128xf32>
    %14 = arith.addf %11, %13 : vector<4x128xf32>
    %c0_10 = arith.constant 0 : index
    %c0_11 = arith.constant 0 : index
    %15 = vector.load %arg6[%c0_10, %c0_11] : memref<4x128xf32, #tpu.memory_space<vmem>>, vector<4x128xf32>
    tpu.vector_store %arg6[%c0_10, %c0_11], %14 {strides = array<i32>} : memref<4x128xf32, #tpu.memory_space<vmem>>, vector<4x128xf32>,
    %c0_12 = arith.constant 0 : index
    %c0_13 = arith.constant 0 : index
    %16 = vector.load %arg7[%c0_12, %c0_13] : memref<4x1xf32, #tpu.memory_space<vmem>>, vector<4x1xf32>
    %cst_14 = arith.constant dense<0.000000e+00> : vector<4xf32>
    %17 = vector.multi_reduction <add>, %14, %cst_14 [1] : vector<4x128xf32> to vector<4xf32>
    %18 = vector.shape_cast %17 : vector<4xf32> to vector<4x1xf32>
    %19 = arith.addf %16, %18 : vector<4x1xf32>
    %c0_15 = arith.constant 0 : index
    %c0_16 = arith.constant 0 : index
    %20 = vector.load %arg7[%c0_15, %c0_16] : memref<4x1xf32, #tpu.memory_space<vmem>>, vector<4x1xf32>
    tpu.vector_store %arg7[%c0_15, %c0_16], %19 {strides = array<i32>} : memref<4x1xf32, #tpu.memory_space<vmem>>, vector<4x1xf32>,
    %c0_17 = arith.constant 0 : index
    %c0_18 = arith.constant 0 : index
    %21 = vector.load %arg8[%c0_17, %c0_18] : memref<4x1xf32, #tpu.memory_space<vmem>>, vector<4x1xf32>
    %22 = arith.mulf %14, %14 : vector<4x128xf32>
    %cst_19 = arith.constant dense<0.000000e+00> : vector<4xf32>
    %23 = vector.multi_reduction <add>, %22, %cst_19 [1] : vector<4x128xf32> to vector<4xf32>
    %24 = vector.shape_cast %23 : vector<4xf32> to vector<4x1xf32>
    %25 = arith.addf %21, %24 : vector<4x1xf32>
    %c0_20 = arith.constant 0 : index
    %c0_21 = arith.constant 0 : index
    %26 = vector.load %arg8[%c0_20, %c0_21] : memref<4x1xf32, #tpu.memory_space<vmem>>, vector<4x1xf32>
    tpu.vector_store %arg8[%c0_20, %c0_21], %25 {strides = array<i32>} : memref<4x1xf32, #tpu.memory_space<vmem>>, vector<4x1xf32>,
    return
  }
  func.func @transform_0(%arg0: i32) -> (i32, i32) {
    %c0_i32 = arith.constant 0 : i32
    %c0_i32_0 = arith.constant 0 : i32
    return %c0_i32, %arg0 : i32, i32
  }
  func.func @transform_1(%arg0: i32) -> (i32, i32) {
    %c0_i32 = arith.constant 0 : i32
    %c0_i32_0 = arith.constant 0 : i32
    %c0_i32_1 = arith.constant 0 : i32
    return %c0_i32, %c0_i32_0 : i32, i32
  }
  func.func @transform_2(%arg0: i32) -> (i32, i32) {
    %c0_i32 = arith.constant 0 : i32
    %c0_i32_0 = arith.constant 0 : i32
    %c0_i32_1 = arith.constant 0 : i32
    return %c0_i32, %c0_i32_0 : i32, i32
  }
  func.func @transform_3(%arg0: i32) -> (i32, i32) {
    %c0_i32 = arith.constant 0 : i32
    %c0_i32_0 = arith.constant 0 : i32
    %c0_i32_1 = arith.constant 0 : i32
    return %c0_i32, %c0_i32_0 : i32, i32
  }
  func.func @transform_4(%arg0: i32) -> (i32, i32) {
    %c0_i32 = arith.constant 0 : i32
    %c0_i32_0 = arith.constant 0 : i32
    %c0_i32_1 = arith.constant 0 : i32
    return %c0_i32, %c0_i32_0 : i32, i32
  }
  func.func @transform_5(%arg0: i32) -> (i32, i32) {
    %c0_i32 = arith.constant 0 : i32
    %c0_i32_0 = arith.constant 0 : i32
    return %c0_i32, %arg0 : i32, i32
  }
  func.func @transform_6(%arg0: i32) -> (i32, i32) {
    %c0_i32 = arith.constant 0 : i32
    %c0_i32_0 = arith.constant 0 : i32
    %c0_i32_1 = arith.constant 0 : i32
    return %c0_i32, %c0_i32_0 : i32, i32
  }
  func.func @transform_7(%arg0: i32) -> (i32, i32) {
    %c0_i32 = arith.constant 0 : i32
    %c0_i32_0 = arith.constant 0 : i32
    %c0_i32_1 = arith.constant 0 : i32
    return %c0_i32, %c0_i32_0 : i32, i32
  }
}

module attributes {stable_mosaic.version = 11 : i64} {
  func.func @_conv_stats_kernel(%arg0: i32, %arg1: memref<36x128xf32, #tpu.memory_space<vmem>>, %arg2: memref<36x1xf32, #tpu.memory_space<vmem>>, %arg3: memref<36x1xf32, #tpu.memory_space<vmem>>, %arg4: memref<8x36xf32, #tpu.memory_space<vmem>>, %arg5: memref<8x1xf32, #tpu.memory_space<vmem>>, %arg6: memref<8x128xf32, #tpu.memory_space<vmem>>, %arg7: memref<8x1xf32, #tpu.memory_space<vmem>>, %arg8: memref<8x1xf32, #tpu.memory_space<vmem>>) attributes {dimension_semantics = [#tpu.dimension_semantics<arbitrary>], iteration_bounds = array<i64: 4>, scalar_prefetch = 0 : i64, scratch_operands = 0 : i64, tpu.core_type = #tpu.core_type<tc>, window_params = [{transform_indices = @transform_0, window_bounds = array<i64: 36, 128>}, {pipeline_mode = #tpu.pipeline_mode<synchronous>, transform_indices = @transform_1, window_bounds = array<i64: 36, 1>}, {pipeline_mode = #tpu.pipeline_mode<synchronous>, transform_indices = @transform_2, window_bounds = array<i64: 36, 1>}, {pipeline_mode = #tpu.pipeline_mode<synchronous>, transform_indices = @transform_3, window_bounds = array<i64: 8, 36>}, {pipeline_mode = #tpu.pipeline_mode<synchronous>, transform_indices = @transform_4, window_bounds = array<i64: 8, 1>}, {transform_indices = @transform_5, window_bounds = array<i64: 8, 128>}, {pipeline_mode = #tpu.pipeline_mode<synchronous>, transform_indices = @transform_6, window_bounds = array<i64: 8, 1>}, {pipeline_mode = #tpu.pipeline_mode<synchronous>, transform_indices = @transform_7, window_bounds = array<i64: 8, 1>}]} {
    %c0_i32 = arith.constant 0 : i32
    %0 = arith.cmpi eq, %arg0, %c0_i32 : i32
    %1 = arith.extui %0 : i1 to i32
    %c0_i32_0 = arith.constant 0 : i32
    %2 = arith.cmpi ne, %1, %c0_i32_0 : i32
    scf.if %2 {
      %cst_22 = arith.constant 0.000000e+00 : f32
      %27 = vector.broadcast %cst_22 : f32 to vector<8x1xf32>
      %c0_23 = arith.constant 0 : index
      %c0_24 = arith.constant 0 : index
      %28 = vector.load %arg7[%c0_23, %c0_24] : memref<8x1xf32, #tpu.memory_space<vmem>>, vector<8x1xf32>
      tpu.vector_store %arg7[%c0_23, %c0_24], %27 {strides = array<i32>} : memref<8x1xf32, #tpu.memory_space<vmem>>, vector<8x1xf32>,
      %cst_25 = arith.constant 0.000000e+00 : f32
      %29 = vector.broadcast %cst_25 : f32 to vector<8x1xf32>
      %c0_26 = arith.constant 0 : index
      %c0_27 = arith.constant 0 : index
      %30 = vector.load %arg8[%c0_26, %c0_27] : memref<8x1xf32, #tpu.memory_space<vmem>>, vector<8x1xf32>
      tpu.vector_store %arg8[%c0_26, %c0_27], %29 {strides = array<i32>} : memref<8x1xf32, #tpu.memory_space<vmem>>, vector<8x1xf32>,
    } else {
    }
    %c0 = arith.constant 0 : index
    %c0_1 = arith.constant 0 : index
    %3 = vector.load %arg1[%c0, %c0_1] : memref<36x128xf32, #tpu.memory_space<vmem>>, vector<36x128xf32>
    %c0_2 = arith.constant 0 : index
    %c0_3 = arith.constant 0 : index
    %4 = vector.load %arg2[%c0_2, %c0_3] : memref<36x1xf32, #tpu.memory_space<vmem>>, vector<36x1xf32>
    %5 = vector.broadcast %4 : vector<36x1xf32> to vector<36x128xf32>
    %6 = arith.mulf %3, %5 : vector<36x128xf32>
    %c0_4 = arith.constant 0 : index
    %c0_5 = arith.constant 0 : index
    %7 = vector.load %arg3[%c0_4, %c0_5] : memref<36x1xf32, #tpu.memory_space<vmem>>, vector<36x1xf32>
    %8 = vector.broadcast %7 : vector<36x1xf32> to vector<36x128xf32>
    %9 = arith.addf %6, %8 : vector<36x128xf32>
    %c0_6 = arith.constant 0 : index
    %c0_7 = arith.constant 0 : index
    %10 = vector.load %arg4[%c0_6, %c0_7] : memref<8x36xf32, #tpu.memory_space<vmem>>, vector<8x36xf32>
    %cst = arith.constant dense<0.000000e+00> : vector<8x128xf32>
    %11 = tpu.matmul %10, %9, %cst {dimension_numbers = #tpu.dot_dimension_numbers<[1], [0], [0], [1], [0, 0, 1, 1], [], []>, precision = #tpu.contract_precision<fp32>} : vector<8x36xf32>, vector<36x128xf32>, vector<8x128xf32> -> vector<8x128xf32>
    %c0_8 = arith.constant 0 : index
    %c0_9 = arith.constant 0 : index
    %12 = vector.load %arg5[%c0_8, %c0_9] : memref<8x1xf32, #tpu.memory_space<vmem>>, vector<8x1xf32>
    %13 = vector.broadcast %12 : vector<8x1xf32> to vector<8x128xf32>
    %14 = arith.addf %11, %13 : vector<8x128xf32>
    %c0_10 = arith.constant 0 : index
    %c0_11 = arith.constant 0 : index
    %15 = vector.load %arg6[%c0_10, %c0_11] : memref<8x128xf32, #tpu.memory_space<vmem>>, vector<8x128xf32>
    tpu.vector_store %arg6[%c0_10, %c0_11], %14 {strides = array<i32>} : memref<8x128xf32, #tpu.memory_space<vmem>>, vector<8x128xf32>,
    %c0_12 = arith.constant 0 : index
    %c0_13 = arith.constant 0 : index
    %16 = vector.load %arg7[%c0_12, %c0_13] : memref<8x1xf32, #tpu.memory_space<vmem>>, vector<8x1xf32>
    %cst_14 = arith.constant dense<0.000000e+00> : vector<8xf32>
    %17 = vector.multi_reduction <add>, %14, %cst_14 [1] : vector<8x128xf32> to vector<8xf32>
    %18 = vector.shape_cast %17 : vector<8xf32> to vector<8x1xf32>
    %19 = arith.addf %16, %18 : vector<8x1xf32>
    %c0_15 = arith.constant 0 : index
    %c0_16 = arith.constant 0 : index
    %20 = vector.load %arg7[%c0_15, %c0_16] : memref<8x1xf32, #tpu.memory_space<vmem>>, vector<8x1xf32>
    tpu.vector_store %arg7[%c0_15, %c0_16], %19 {strides = array<i32>} : memref<8x1xf32, #tpu.memory_space<vmem>>, vector<8x1xf32>,
    %c0_17 = arith.constant 0 : index
    %c0_18 = arith.constant 0 : index
    %21 = vector.load %arg8[%c0_17, %c0_18] : memref<8x1xf32, #tpu.memory_space<vmem>>, vector<8x1xf32>
    %22 = arith.mulf %14, %14 : vector<8x128xf32>
    %cst_19 = arith.constant dense<0.000000e+00> : vector<8xf32>
    %23 = vector.multi_reduction <add>, %22, %cst_19 [1] : vector<8x128xf32> to vector<8xf32>
    %24 = vector.shape_cast %23 : vector<8xf32> to vector<8x1xf32>
    %25 = arith.addf %21, %24 : vector<8x1xf32>
    %c0_20 = arith.constant 0 : index
    %c0_21 = arith.constant 0 : index
    %26 = vector.load %arg8[%c0_20, %c0_21] : memref<8x1xf32, #tpu.memory_space<vmem>>, vector<8x1xf32>
    tpu.vector_store %arg8[%c0_20, %c0_21], %25 {strides = array<i32>} : memref<8x1xf32, #tpu.memory_space<vmem>>, vector<8x1xf32>,
    return
  }
  func.func @transform_0(%arg0: i32) -> (i32, i32) {
    %c0_i32 = arith.constant 0 : i32
    %c0_i32_0 = arith.constant 0 : i32
    return %c0_i32, %arg0 : i32, i32
  }
  func.func @transform_1(%arg0: i32) -> (i32, i32) {
    %c0_i32 = arith.constant 0 : i32
    %c0_i32_0 = arith.constant 0 : i32
    %c0_i32_1 = arith.constant 0 : i32
    return %c0_i32, %c0_i32_0 : i32, i32
  }
  func.func @transform_2(%arg0: i32) -> (i32, i32) {
    %c0_i32 = arith.constant 0 : i32
    %c0_i32_0 = arith.constant 0 : i32
    %c0_i32_1 = arith.constant 0 : i32
    return %c0_i32, %c0_i32_0 : i32, i32
  }
  func.func @transform_3(%arg0: i32) -> (i32, i32) {
    %c0_i32 = arith.constant 0 : i32
    %c0_i32_0 = arith.constant 0 : i32
    %c0_i32_1 = arith.constant 0 : i32
    return %c0_i32, %c0_i32_0 : i32, i32
  }
  func.func @transform_4(%arg0: i32) -> (i32, i32) {
    %c0_i32 = arith.constant 0 : i32
    %c0_i32_0 = arith.constant 0 : i32
    %c0_i32_1 = arith.constant 0 : i32
    return %c0_i32, %c0_i32_0 : i32, i32
  }
  func.func @transform_5(%arg0: i32) -> (i32, i32) {
    %c0_i32 = arith.constant 0 : i32
    %c0_i32_0 = arith.constant 0 : i32
    return %c0_i32, %arg0 : i32, i32
  }
  func.func @transform_6(%arg0: i32) -> (i32, i32) {
    %c0_i32 = arith.constant 0 : i32
    %c0_i32_0 = arith.constant 0 : i32
    %c0_i32_1 = arith.constant 0 : i32
    return %c0_i32, %c0_i32_0 : i32, i32
  }
  func.func @transform_7(%arg0: i32) -> (i32, i32) {
    %c0_i32 = arith.constant 0 : i32
    %c0_i32_0 = arith.constant 0 : i32
    %c0_i32_1 = arith.constant 0 : i32
    return %c0_i32, %c0_i32_0 : i32, i32
  }
}

module attributes {stable_mosaic.version = 11 : i64} {
  func.func @_conv_stats_kernel(%arg0: i32, %arg1: memref<8x128xf32, #tpu.memory_space<vmem>>, %arg2: memref<8x1xf32, #tpu.memory_space<vmem>>, %arg3: memref<8x1xf32, #tpu.memory_space<vmem>>, %arg4: memref<4x8xf32, #tpu.memory_space<vmem>>, %arg5: memref<4x1xf32, #tpu.memory_space<vmem>>, %arg6: memref<4x128xf32, #tpu.memory_space<vmem>>, %arg7: memref<4x1xf32, #tpu.memory_space<vmem>>, %arg8: memref<4x1xf32, #tpu.memory_space<vmem>>) attributes {dimension_semantics = [#tpu.dimension_semantics<arbitrary>], iteration_bounds = array<i64: 4>, scalar_prefetch = 0 : i64, scratch_operands = 0 : i64, tpu.core_type = #tpu.core_type<tc>, window_params = [{transform_indices = @transform_0, window_bounds = array<i64: 8, 128>}, {pipeline_mode = #tpu.pipeline_mode<synchronous>, transform_indices = @transform_1, window_bounds = array<i64: 8, 1>}, {pipeline_mode = #tpu.pipeline_mode<synchronous>, transform_indices = @transform_2, window_bounds = array<i64: 8, 1>}, {pipeline_mode = #tpu.pipeline_mode<synchronous>, transform_indices = @transform_3, window_bounds = array<i64: 4, 8>}, {pipeline_mode = #tpu.pipeline_mode<synchronous>, transform_indices = @transform_4, window_bounds = array<i64: 4, 1>}, {transform_indices = @transform_5, window_bounds = array<i64: 4, 128>}, {pipeline_mode = #tpu.pipeline_mode<synchronous>, transform_indices = @transform_6, window_bounds = array<i64: 4, 1>}, {pipeline_mode = #tpu.pipeline_mode<synchronous>, transform_indices = @transform_7, window_bounds = array<i64: 4, 1>}]} {
    %c0_i32 = arith.constant 0 : i32
    %0 = arith.cmpi eq, %arg0, %c0_i32 : i32
    %1 = arith.extui %0 : i1 to i32
    %c0_i32_0 = arith.constant 0 : i32
    %2 = arith.cmpi ne, %1, %c0_i32_0 : i32
    scf.if %2 {
      %cst_24 = arith.constant 0.000000e+00 : f32
      %36 = vector.broadcast %cst_24 : f32 to vector<4x1xf32>
      %c0_25 = arith.constant 0 : index
      %c0_26 = arith.constant 0 : index
      %37 = vector.load %arg7[%c0_25, %c0_26] : memref<4x1xf32, #tpu.memory_space<vmem>>, vector<4x1xf32>
      tpu.vector_store %arg7[%c0_25, %c0_26], %36 {strides = array<i32>} : memref<4x1xf32, #tpu.memory_space<vmem>>, vector<4x1xf32>,
      %cst_27 = arith.constant 0.000000e+00 : f32
      %38 = vector.broadcast %cst_27 : f32 to vector<4x1xf32>
      %c0_28 = arith.constant 0 : index
      %c0_29 = arith.constant 0 : index
      %39 = vector.load %arg8[%c0_28, %c0_29] : memref<4x1xf32, #tpu.memory_space<vmem>>, vector<4x1xf32>
      tpu.vector_store %arg8[%c0_28, %c0_29], %38 {strides = array<i32>} : memref<4x1xf32, #tpu.memory_space<vmem>>, vector<4x1xf32>,
    } else {
    }
    %c0 = arith.constant 0 : index
    %c0_1 = arith.constant 0 : index
    %3 = vector.load %arg1[%c0, %c0_1] : memref<8x128xf32, #tpu.memory_space<vmem>>, vector<8x128xf32>
    %c0_2 = arith.constant 0 : index
    %c0_3 = arith.constant 0 : index
    %4 = vector.load %arg2[%c0_2, %c0_3] : memref<8x1xf32, #tpu.memory_space<vmem>>, vector<8x1xf32>
    %5 = vector.broadcast %4 : vector<8x1xf32> to vector<8x128xf32>
    %6 = arith.mulf %3, %5 : vector<8x128xf32>
    %c0_4 = arith.constant 0 : index
    %c0_5 = arith.constant 0 : index
    %7 = vector.load %arg3[%c0_4, %c0_5] : memref<8x1xf32, #tpu.memory_space<vmem>>, vector<8x1xf32>
    %8 = vector.broadcast %7 : vector<8x1xf32> to vector<8x128xf32>
    %9 = arith.addf %6, %8 : vector<8x128xf32>
    %cst = arith.constant 2.000000e+01 : f32
    %10 = vector.broadcast %cst : f32 to vector<8x128xf32>
    %11 = arith.cmpf ogt, %9, %10 : vector<8x128xf32>
    %cst_6 = arith.constant 2.000000e+01 : f32
    %12 = vector.broadcast %cst_6 : f32 to vector<8x128xf32>
    %13 = arith.minimumf %9, %12 : vector<8x128xf32>
    %14 = math.exp %13 : vector<8x128xf32>
    %15 = math.log1p %14 : vector<8x128xf32>
    %16 = arith.select %11, %9, %15 : vector<8x128xi1>, vector<8x128xf32>
    %17 = math.tanh %16 : vector<8x128xf32>
    %18 = arith.mulf %9, %17 : vector<8x128xf32>
    %c0_7 = arith.constant 0 : index
    %c0_8 = arith.constant 0 : index
    %19 = vector.load %arg4[%c0_7, %c0_8] : memref<4x8xf32, #tpu.memory_space<vmem>>, vector<4x8xf32>
    %cst_9 = arith.constant dense<0.000000e+00> : vector<4x128xf32>
    %20 = tpu.matmul %19, %18, %cst_9 {dimension_numbers = #tpu.dot_dimension_numbers<[1], [0], [0], [1], [0, 0, 1, 1], [], []>, precision = #tpu.contract_precision<fp32>} : vector<4x8xf32>, vector<8x128xf32>, vector<4x128xf32> -> vector<4x128xf32>
    %c0_10 = arith.constant 0 : index
    %c0_11 = arith.constant 0 : index
    %21 = vector.load %arg5[%c0_10, %c0_11] : memref<4x1xf32, #tpu.memory_space<vmem>>, vector<4x1xf32>
    %22 = vector.broadcast %21 : vector<4x1xf32> to vector<4x128xf32>
    %23 = arith.addf %20, %22 : vector<4x128xf32>
    %c0_12 = arith.constant 0 : index
    %c0_13 = arith.constant 0 : index
    %24 = vector.load %arg6[%c0_12, %c0_13] : memref<4x128xf32, #tpu.memory_space<vmem>>, vector<4x128xf32>
    tpu.vector_store %arg6[%c0_12, %c0_13], %23 {strides = array<i32>} : memref<4x128xf32, #tpu.memory_space<vmem>>, vector<4x128xf32>,
    %c0_14 = arith.constant 0 : index
    %c0_15 = arith.constant 0 : index
    %25 = vector.load %arg7[%c0_14, %c0_15] : memref<4x1xf32, #tpu.memory_space<vmem>>, vector<4x1xf32>
    %cst_16 = arith.constant dense<0.000000e+00> : vector<4xf32>
    %26 = vector.multi_reduction <add>, %23, %cst_16 [1] : vector<4x128xf32> to vector<4xf32>
    %27 = vector.shape_cast %26 : vector<4xf32> to vector<4x1xf32>
    %28 = arith.addf %25, %27 : vector<4x1xf32>
    %c0_17 = arith.constant 0 : index
    %c0_18 = arith.constant 0 : index
    %29 = vector.load %arg7[%c0_17, %c0_18] : memref<4x1xf32, #tpu.memory_space<vmem>>, vector<4x1xf32>
    tpu.vector_store %arg7[%c0_17, %c0_18], %28 {strides = array<i32>} : memref<4x1xf32, #tpu.memory_space<vmem>>, vector<4x1xf32>,
    %c0_19 = arith.constant 0 : index
    %c0_20 = arith.constant 0 : index
    %30 = vector.load %arg8[%c0_19, %c0_20] : memref<4x1xf32, #tpu.memory_space<vmem>>, vector<4x1xf32>
    %31 = arith.mulf %23, %23 : vector<4x128xf32>
    %cst_21 = arith.constant dense<0.000000e+00> : vector<4xf32>
    %32 = vector.multi_reduction <add>, %31, %cst_21 [1] : vector<4x128xf32> to vector<4xf32>
    %33 = vector.shape_cast %32 : vector<4xf32> to vector<4x1xf32>
    %34 = arith.addf %30, %33 : vector<4x1xf32>
    %c0_22 = arith.constant 0 : index
    %c0_23 = arith.constant 0 : index
    %35 = vector.load %arg8[%c0_22, %c0_23] : memref<4x1xf32, #tpu.memory_space<vmem>>, vector<4x1xf32>
    tpu.vector_store %arg8[%c0_22, %c0_23], %34 {strides = array<i32>} : memref<4x1xf32, #tpu.memory_space<vmem>>, vector<4x1xf32>,
    return
  }
  func.func @transform_0(%arg0: i32) -> (i32, i32) {
    %c0_i32 = arith.constant 0 : i32
    %c0_i32_0 = arith.constant 0 : i32
    return %c0_i32, %arg0 : i32, i32
  }
  func.func @transform_1(%arg0: i32) -> (i32, i32) {
    %c0_i32 = arith.constant 0 : i32
    %c0_i32_0 = arith.constant 0 : i32
    %c0_i32_1 = arith.constant 0 : i32
    return %c0_i32, %c0_i32_0 : i32, i32
  }
  func.func @transform_2(%arg0: i32) -> (i32, i32) {
    %c0_i32 = arith.constant 0 : i32
    %c0_i32_0 = arith.constant 0 : i32
    %c0_i32_1 = arith.constant 0 : i32
    return %c0_i32, %c0_i32_0 : i32, i32
  }
  func.func @transform_3(%arg0: i32) -> (i32, i32) {
    %c0_i32 = arith.constant 0 : i32
    %c0_i32_0 = arith.constant 0 : i32
    %c0_i32_1 = arith.constant 0 : i32
    return %c0_i32, %c0_i32_0 : i32, i32
  }
  func.func @transform_4(%arg0: i32) -> (i32, i32) {
    %c0_i32 = arith.constant 0 : i32
    %c0_i32_0 = arith.constant 0 : i32
    %c0_i32_1 = arith.constant 0 : i32
    return %c0_i32, %c0_i32_0 : i32, i32
  }
  func.func @transform_5(%arg0: i32) -> (i32, i32) {
    %c0_i32 = arith.constant 0 : i32
    %c0_i32_0 = arith.constant 0 : i32
    return %c0_i32, %arg0 : i32, i32
  }
  func.func @transform_6(%arg0: i32) -> (i32, i32) {
    %c0_i32 = arith.constant 0 : i32
    %c0_i32_0 = arith.constant 0 : i32
    %c0_i32_1 = arith.constant 0 : i32
    return %c0_i32, %c0_i32_0 : i32, i32
  }
  func.func @transform_7(%arg0: i32) -> (i32, i32) {
    %c0_i32 = arith.constant 0 : i32
    %c0_i32_0 = arith.constant 0 : i32
    %c0_i32_1 = arith.constant 0 : i32
    return %c0_i32, %c0_i32_0 : i32, i32
  }
}

</mosaic_0001>

<bundles_post_ra>
// kernel: _lambda_.9
= control target key start
LH: loop header
LB: loop body
LE: loop exit
PB: predicated region body
PF: predicated region fallthrough
CT: control target
= control target key end

     0   :  { %s305_s12 = smov 0   ;;  %s328_s0 = inlined_call_operand.vmem [shape: f32[4,512], index: 0, kind: input, shape index: {}]   ;;  %s329_s1 = inlined_call_operand.vmem [shape: f32[4,1], index: 1, kind: input, shape index: {}]   ;;  %s330_s2 = inlined_call_operand.vmem [shape: f32[4,1], index: 2, kind: input, shape index: {}]   ;;  %s331_s3 = inlined_call_operand.vmem [shape: f32[4,512], index: 3, kind: output, shape index: {}]  }
   0x1 LB: > { %s251_s13 = sadd.s32 4294967295, %s282_s12   ;;  %p255_p0 = scmp.ge.s32.totalorder %s282_s12, 1  ;;  %s282_s12 = sphi %s305_s12, %s13_s12  }
   0x2   : > { %p136_p1 = scmp.lt.s32.totalorder %s282_s12, 5 }
   0x4   : > { %p137_p2 = pnand %p255_p0, %p136_p1 }
   0x5   : > { %p158_p3 = scmp.lt.s32.totalorder (!%p137_p2), %s251_s13, 3 }
   0x6   : > { %140 = sbr.rel (%p137_p2) target bundleno = 198 (0xc6), region = 32 }
   0xb   : > { %v167_v0 = vld [vmem:[%s329_s1] sm:$0xf]  ;;  %v284_v1 = vmov 0   ;;  %s333_s13 = smov (!%p158_p3, %s251_s13), 3 }
   0xc   : > { %269 = vset.pattern.permute.xlu0 %v284_v1  ;;  %v174_v2 = vld [vmem:[%s330_s2] sm:$0xf]  ;;  %s256_s18 = sshll.u32 %s333_s13, 2 }
   0xd   : > { %170 = vperm.xlu0 %269, %v167_v0   ;;  %s161_s21 = scalar_lea.vmem %s328_s0, %s256_s18  ;;  %s165_s24 = scalar_lea.vmem %s331_s3, %s256_s18 }
   0xe   : > { %v166_v4 = vld [vmem:[%s161_s21] sm:$0xf] }
  0x11   : > { %177 = vperm.xlu0 %269, %v174_v2  }
  0x88   : > { %v171_v3 = vpop.permute.xlu0 %170 }
  0x89   : > { %v173_v5 = vmul.f32 %v171_v3, %v166_v4 }
  0x8c   : > { %v178_v6 = vpop.permute.xlu0 %177 }
  0x8d   : > { %v180_v7 = vadd.f32 %v178_v6, %v173_v5 }
  0x8f   : > { %v182_v8 = vmin.f32 %v180_v7, 20.0  ;;  %vm181_vm1 = vcmp.gt.f32.partialorder %v180_v7, 20.0 }
  0x91   : > { %v183_v9 = vmul.f32 1.442695, %v182_v8 }
  0x93   : > { %270 = vpow2.f32 %v183_v9 }
  0xa0   : > { %v271_v10 = vpop.eup %270 }
  0xa1   : > { %v185_v11 = vadd.f32 1.0, %v271_v10  ;;  %v188_v12 = vmul.f32 -0.5, %v271_v10  ;;  %v191_v14 = vand.u32 2147483647, %v271_v10 }
  0xa3   : > { %272 = vlog2.f32 %v185_v11  ;;  %v189_v13 = vadd.f32 1.0, %v188_v12  ;;  %vm192_vm0 = vcmp.lt.f32.partialorder %v191_v14, 0.0004427343 }
  0xa5   : > { %v190_v17 = vmul.f32 %v271_v10, %v189_v13 }
  0xb0   : > { %v273_v15 = vpop.eup %272 }
  0xb1   : > { %v187_v16 = vmul.f32 0.6931472, %v273_v15 }
  0xb3   : > { %v193_v18 = vsel %vm192_vm0, %v190_v17, %v187_v16 }
  0xb4   : > { %v194_v19 = vsel %vm181_vm1, %v180_v7, %v193_v18 }
  0xb5   : > { %274 = vtanh.f32 %v194_v19 }
  0xc2   : > { %v275_v20 = vpop.eup %274 }
  0xc3   : > { %v196_v21 = vmul.f32 %v275_v20, %v180_v7 }
  0xc5   : > { %197 = vst [vmem:[%s165_s24] sm:$0xf] %v196_v21 }
  0xc6 PF: > { %s13_s12 = sadd.s32 1, %s282_s12  }
  0xc7   : > { %p10_p4 = scmp.ge.s32.totalorder %s13_s12, 6  }
  0xc9   :  { %12 = sbr.rel (!%p10_p4) target bundleno = 1 (0x1), region = 62 }

// kernel: _lambda_.8
= control target key start
LH: loop header
LB: loop body
LE: loop exit
PB: predicated region body
PF: predicated region fallthrough
CT: control target
= control target key end

     0   :  { %s947_s24 = smov 0   ;;  %s1006_s0 = inlined_call_operand.vmem [shape: f32[8,512], index: 0, kind: input, shape index: {}]   ;;  %s1007_s1 = inlined_call_operand.vmem [shape: f32[8,1], index: 1, kind: input, shape index: {}]   ;;  %s1008_s2 = inlined_call_operand.vmem [shape: f32[8,1], index: 2, kind: input, shape index: {}]   ;;  %s1009_s3 = inlined_call_operand.vmem [shape: f32[4,8], index: 3, kind: input, shape index: {}]   ;;  %s1010_s4 = inlined_call_operand.vmem [shape: f32[4,1], index: 4, kind: input, shape index: {}]   ;;  %s1011_s5 = inlined_call_operand.vmem [shape: f32[4,512], index: 5, kind: output, shape index: {0}]   ;;  %s1012_s6 = inlined_call_operand.vmem [shape: f32[4,1], index: 6, kind: output, shape index: {1}]   ;;  %s1013_s7 = inlined_call_operand.vmem [shape: f32[4,1], index: 7, kind: output, shape index: {2}]  }
   0x1 LB: > { %s829_s25 = sadd.s32 4294967295, %s901_s24   ;;  %p833_p0 = scmp.ge.s32.totalorder %s901_s24, 1  ;;  %s901_s24 = sphi %s947_s24, %s18_s24  }
   0x2   : > { %p231_p1 = scmp.lt.s32.totalorder %s901_s24, 5 }
   0x4   : > { %p232_p2 = pnand %p833_p0, %p231_p1 }
   0x5   : > { %p261_p3 = scmp.lt.s32.totalorder (!%p232_p2), %s829_s25, 3  ;;  %p836_p4 = scmp.ne.s32.totalorder (!%p232_p2), %s829_s25, 0 }
   0x6   : > { %235 = sbr.rel (%p232_p2) target bundleno = 509 (0x1fd), region = 40 }
   0xb   : > { %s262_s26 = scalar_select %p261_p3, %s829_s25, 3 }
   0xc   : > { %272 = sbr.rel (%p836_p4) target bundleno = 19 (0x13), region = 44 }
   0xd   : > { %s834_s27 = sshll.u32 %s262_s26, 3  ;;  %s835_s28 = sshll.u32 %s262_s26, 2 }
   0xe   : > { %s958_s8 = scalar_lea.vmem %s1006_s0, %s834_s27  ;;  %s963_s11 = scalar_lea.vmem %s1011_s5, %s835_s28 }
  0x11   : > { %vm273_vm0 = vcmask 3072   ;;  %v903_v0 = vmov 0.0  }
  0x12   : > { %274 = vst.msk [vmem:[%s1012_s6] sm:$0xf] %vm273_vm0, %v903_v0  ;;  %275 = vst.msk [vmem:[%s1013_s7] sm:$0xf] %vm273_vm0, %v903_v0 }
  0x13 PF: > { %v277_v1 = vld [vmem:[%s1007_s1] sm:$0xff]  ;;  %v904_v2 = vmov 0   ;;  %v905_v4 = vmov 0.0   ;;  %vm906_vm1 = vmmov 0   ;;  %vm298_vm2 = vcmask 64512  }
  0x14   : > { %893 = vset.pattern.permute.xlu0 %v904_v2  ;;  %894 = vset.pattern.permute.xlu1 %v904_v2  ;;  %v284_v3 = vld [vmem:[%s1008_s2] sm:$0xff]  ;;  %vm750_vm3 = vcmask 1043456   ;;  %vm755_vm4 = vcmask 3072  }
  0x15   : > { %280 = vperm.xlu0 %893, %v277_v1   ;;  %851 = vmatprep.subr.mxu0 %v905_v4  ;;  %v292_v5 = vld [vmem:[%s1010_s4] sm:$0xf] }
  0x16   : > { %856 = vmatprep.subr.mxu1 %v905_v4  ;;  %853 = vmatprep.mubr.msk.f32.mxu0 %vm906_vm1, %v905_v4  ;;  %v291_v6 = vld [vmem:[%s1009_s3] sm:$0xf] }
  0x17   : > { %858 = vmatprep.mubr.msk.f32.mxu1 %vm906_vm1, %v905_v4  ;;  %295 = vperm.xlu1 %894, %v292_v5   ;;  %v300_v7 = vsel %vm298_vm2, %v291_v6, 0  ;;  %v276_v12 = vld [vmem:[%s958_s8] sm:$0xff] }
  0x18   : > { %v368_v8 = vand.u32 4294901760, %v300_v7 }
  0x19   : > { %287 = vperm.xlu0 %893, %v284_v3   ;;  %v749_v45 = vld [vmem:[%s1012_s6] sm:$0xf] }
  0x1a   : > { %v369_v9 = vsub.f32 %v300_v7, %v368_v8  ;;  %v757_v47 = vld [vmem:[%s1013_s7] sm:$0xf] }
  0x1c   : > { %v370_v10 = vand.u32 4294901760, %v369_v9 }
  0x1e   : > { %v371_v13 = vsub.f32 %v369_v9, %v370_v10 }
  0x20   : > { %v372_v17 = vand.u32 4294901760, %v371_v13 }
  0x90   : > { %v281_v11 = vpop.permute.xlu0 %280 }
  0x91   : > { %v283_v14 = vmul.f32 %v281_v11, %v276_v12 }
  0x92   : > { %v296_v24 = vpop.permute.xlu1 %295 }
  0x94   : > { %v288_v15 = vpop.permute.xlu0 %287 }
  0x95   : > { %v290_v16 = vadd.f32 %v288_v15, %v283_v14 }
  0x97   : > { %v333_v18 = vand.u32 4294901760, %v290_v16 }
  0x99   : > { %v410_v19 = vsub.f32 %v290_v16, %v333_v18  ;;  %852 = vmatpush3.msra.mxu0 %v333_v18 }
  0x9a   : > { %854 = vmatmul.mubr.f32.vlgmr.msra.gmra.mxu0 %v372_v17  ;;  %861 = vmatprep.subr.mxu0 %v905_v4 }
  0x9b   : > { %v411_v20 = vand.u32 4294901760, %v410_v19  ;;  %862 = vmatpush3.msra.mxu0 %v410_v19  ;;  %863 = vmatprep.mubr.msk.f32.mxu0 %vm906_vm1, %v905_v4 }
  0x9c   : > { %871 = vmatprep.subr.mxu0 %v905_v4 }
  0x9d   : > { %v412_v21 = vsub.f32 %v410_v19, %v411_v20 }
  0x9e   : > { %864 = vmatmul.mubr.f32.vlgmr.msra.gmra.mxu0 %v369_v9 }
  0x9f   : > { %872 = vmatpush3.msra.mxu0 %v411_v20  ;;  %v413_v22 = vand.u32 4294901760, %v412_v21  ;;  %873 = vmatprep.mubr.msk.f32.mxu0 %vm906_vm1, %v905_v4 }
  0xa1   : > { %857 = vmatpush3.msra.mxu1 %v413_v22 }
  0xa2   : > { %859 = vmatmul.mubr.f32.vlgmr.msra.gmra.mxu1 %v368_v8  ;;  %866 = vmatprep.subr.mxu1 %v905_v4 }
  0xa3   : > { %867 = vmatpush3.msra.mxu1 %v333_v18  ;;  %868 = vmatprep.mubr.msk.f32.mxu1 %vm906_vm1, %v905_v4 }
  0xa4   : > { %876 = vmatprep.subr.mxu1 %v905_v4  ;;  %874 = vmatmul.mubr.f32.vlgmr.msra.gmra.mxu0 %v368_v8 }
  0xa6   : > { %869 = vmatmul.mubr.f32.vlgmr.msra.gmra.mxu1 %v370_v10 }
  0xa7   : > { %877 = vmatpush3.msra.mxu1 %v333_v18  ;;  %878 = vmatprep.mubr.msk.f32.mxu1 %vm906_vm1, %v905_v4 }
  0xaa   : > { %879 = vmatmul.mubr.f32.vlgmr.msra.gmra.mxu1 %v368_v8 }
 0x15a   : > { %v374_v23 = vpop.f32.mrf.mxu0 }
 0x15b   : > { %v375_v27 = vadd.f32 %v374_v23, %v296_v24 }
 0x15c   : > { %v855_v25 = vpop.f32.mrf.mxu0 }
 0x15e   : > { %v524_v26 = vpop.f32.mrf.mxu0 }
 0x160   : > { %v865_v28 = vpop.f32.mrf.mxu0 }
 0x162   : > { %v450_v29 = vpop.f32.mrf.mxu1 }
 0x163   : > { %v451_v30 = vadd.f32 %v450_v29, %v375_v27 }
 0x164   : > { %v860_v31 = vpop.f32.mrf.mxu1  ;;  %v672_v32 = vpop.f32.mrf.mxu0 }
 0x165   : > { %v525_v33 = vadd.f32 %v524_v26, %v451_v30 }
 0x166   : > { %v598_v34 = vpop.f32.mrf.mxu1  ;;  %v875_v35 = vpop.f32.mrf.mxu0 }
 0x167   : > { %v599_v36 = vadd.f32 %v598_v34, %v525_v33 }
 0x168   : > { %v870_v37 = vpop.f32.mrf.mxu1 }
 0x169   : > { %v673_v38 = vadd.f32 %v672_v32, %v599_v36 }
 0x16a   : > { %v744_v39 = vpop.f32.mrf.mxu1 }
 0x16b   : > { %v745_v40 = vadd.f32 %v744_v39, %v673_v38 }
 0x16c   : > { %v880_v41 = vpop.f32.mrf.mxu1 }
 0x16d   : > { %748 = vst [vmem:[%s963_s11] sm:$0xf] %v745_v40  ;;  %v751_v42 = vsel %vm750_vm3, %v745_v40, 0.0  ;;  %v758_v43 = vmul.f32 %v745_v40, %v745_v40 }
 0x16e   : > { %752 = vadd.xlane.f32.xlu1 %v751_v42 }
 0x16f   : > { %v759_v44 = vsel %vm750_vm3, %v758_v43, 0.0 }
 0x170   : > { %760 = vadd.xlane.f32.xlu0 %v759_v44 }
 0x1f7   : > { %v753_v46 = vpop.xlane.xlu1 %752 }
 0x1f8   : > { %v754_v48 = vadd.f32 %v753_v46, %v749_v45 }
 0x1f9   : > { %v761_v49 = vpop.xlane.xlu0 %760 }
 0x1fa   : > { %756 = vst.msk [vmem:[%s1012_s6] sm:$0xf] %vm755_vm4, %v754_v48  ;;  %v762_v50 = vadd.f32 %v761_v49, %v757_v47 }
 0x1fc   : > { %763 = vst.msk [vmem:[%s1013_s7] sm:$0xf] %vm755_vm4, %v762_v50 }
 0x1fd PF: > { %s18_s24 = sadd.s32 1, %s901_s24  }
 0x1fe   : > { %p15_p5 = scmp.ge.s32.totalorder %s18_s24, 6  }
 0x200   :  { %17 = sbr.rel (!%p15_p5) target bundleno = 1 (0x1), region = 90 }

// kernel: _lambda_.10
= control target key start
LH: loop header
LB: loop body
LE: loop exit
PB: predicated region body
PF: predicated region fallthrough
CT: control target
= control target key end

     0   :  { %s1226_s24 = smov 0   ;;  %s1228_s25 = smov 0   ;;  %s1446_s0 = inlined_call_operand.vmem [shape: f32[36,512], index: 0, kind: input, shape index: {}]   ;;  %s1447_s1 = inlined_call_operand.vmem [shape: f32[36,1], index: 1, kind: input, shape index: {}]   ;;  %s1448_s2 = inlined_call_operand.vmem [shape: f32[36,1], index: 2, kind: input, shape index: {}]   ;;  %s1449_s3 = inlined_call_operand.vmem [shape: f32[8,36], index: 3, kind: input, shape index: {}]   ;;  %s1450_s4 = inlined_call_operand.vmem [shape: f32[8,1], index: 4, kind: input, shape index: {}]   ;;  %s1451_s5 = inlined_call_operand.vmem [shape: f32[8,512], index: 5, kind: output, shape index: {0}]   ;;  %s1452_s6 = inlined_call_operand.vmem [shape: f32[8,1], index: 6, kind: output, shape index: {1}]   ;;  %s1453_s7 = inlined_call_operand.vmem [shape: f32[8,1], index: 7, kind: output, shape index: {2}]  }
   0x1   :  { %s1230_s26 = smov 0  }
   0x2 LB: > { %s1242_s27 = sadd.s32 4294967295, %s1180_s26   ;;  %s1245_s28 = sadd.s32 1, %s1180_s26   ;;  %s1180_s26 = sphi %s1230_s26, %s1456_s26   ;;  %s1176_s25 = sphi %s1228_s25, %s1455_s25   ;;  %s1172_s24 = sphi %s1226_s24, %s1454_s24  }
   0x3   : > { %s22_s29 = ssub.s32 %s1180_s26, %s1245_s28  ;;  %s25_s30 = sadd.s32 1, %s1176_s25 }
   0x4   : > { %p23_p0 = scmp.eq.s32.totalorder %s22_s29, 0  ;;  %p32_p1 = scmp.ne.s32.totalorder %s1176_s25, %s1172_s24 }
   0x5   : > { %p33_p2 = scmp.eq.s32.totalorder %s1180_s26, 0  ;;  %p1005_p4 = scmp.ge.s32.totalorder %s1180_s26, 4 }
   0x6   : > { %s1254_s8 = scalar_select %p23_p0, %s1176_s25, %s25_s30  }
   0x7   : > { %p34_p3 = por %p33_p2, %p32_p1  ;;  %222 = sbr.rel (%p1005_p4) target bundleno = 21 (0x15), region = 32 }
   0xc   : > { %225 = sbr.rel (!%p34_p3) target bundleno = 21 (0x15), region = 36  ;;  %s227_s9 = sand.u32 (%p34_p3), 1, %s1176_s25  }
   0xd   : > { %s1006_s10 = sshll.u32 (%p34_p3), %s1180_s26, 3  ;;  %s1126_s11 = smul.u32 (%p34_p3), 40, %s227_s9 }
   0xe   : > { %s231_s14 = scalar_lea.vmem (%p34_p3), %s1446_s0, %s1006_s10 }
   0xf   : > { %v268_v0 = vld [vmem:[%s231_s14] sm:$0xff] (%p34_p3)  ;;  %s229_s15 = scalar_lea.vmem (%p34_p3), [#allocation2], %s1126_s11 }
  0x10   : > { %v270_v1 = vld [vmem:[%s231_s14 + $0x20] sm:$0xff] (%p34_p3)  ;;  %269 = vst [vmem:[%s229_s15] sm:$0xff] (%p34_p3), %v268_v0 }
  0x11   : > { %v272_v2 = vld [vmem:[%s231_s14 + $0x40] sm:$0xff]  ;;  %271 = vst [vmem:[%s229_s15 + $0x8] sm:$0xff] %v270_v1 }
  0x12   : > { %v274_v3 = vld [vmem:[%s231_s14 + $0x60] sm:$0xff]  ;;  %273 = vst [vmem:[%s229_s15 + $0x10] sm:$0xff] %v272_v2 }
  0x13   : > { %v276_v4 = vld [vmem:[%s231_s14 + $0x80] sm:$0xff]  ;;  %275 = vst [vmem:[%s229_s15 + $0x18] sm:$0xff] %v274_v3 }
  0x14   : > { %277 = vst [vmem:[%s229_s15 + $0x20] sm:$0xff] %v276_v4 }
  0x15 PF: > { %p1007_p5 = scmp.ge.s32.totalorder %s1180_s26, 1  ;;  %p282_p6 = scmp.lt.s32.totalorder %s1180_s26, 5 }
  0x17   : > { %p283_p7 = pnand %p1007_p5, %p282_p6 }
  0x18   : > { %s289_s16 = sand.u32 (!%p283_p7), 1, %s1172_s24   ;;  %p319_p8 = scmp.lt.s32.totalorder (!%p283_p7), %s1242_s27, 3 }
  0x19   : > { %286 = sbr.rel (%p283_p7) target bundleno = 556 (0x22c), region = 74  ;;  %p1009_p9 = scmp.ne.s32.totalorder (!%p283_p7), %s1242_s27, 0 }
  0x1a   : > { %s1127_s17 = smul.u32 (!%p283_p7), 40, %s289_s16 }
  0x1c   : > { %s1272_s23 = scalar_lea.vmem (!%p283_p7), [#allocation2], %s1127_s17 }
  0x1e   : > { %s320_s18 = scalar_select %p319_p8, %s1242_s27, 3 }
  0x1f   : > { %326 = sbr.rel (%p1009_p9) target bundleno = 38 (0x26), region = 82 }
  0x20   : > { %s1008_s19 = sshll.u32 %s320_s18, 3 }
  0x21   : > { %s1270_s22 = scalar_lea.vmem %s1451_s5, %s1008_s19 }
  0x24   : > { %vm327_vm0 = vcmask 7168   ;;  %v1182_v5 = vmov 0.0  }
  0x25   : > { %328 = vst.msk [vmem:[%s1452_s6] sm:$0xff] %vm327_vm0, %v1182_v5  ;;  %329 = vst.msk [vmem:[%s1453_s7] sm:$0xff] %vm327_vm0, %v1182_v5 }
  0x26 PF: > { %v339_v6 = vld [vmem:[%s1447_s1 + $0x20] sm:$0xf]  ;;  %v338_v7 = vld [vmem:[%s1447_s1 + $0x18] sm:$0xff]  ;;  %v1183_v8 = vmov 0   ;;  %v337_v10 = vld [vmem:[%s1447_s1 + $0x10] sm:$0xff]  ;;  %v1184_v13 = vmov 0.0  }
  0x27   : > { %1157 = vset.pattern.permute.xlu1 %v1183_v8  ;;  %1156 = vset.pattern.permute.xlu0 %v1183_v8  ;;  %v374_v9 = vld [vmem:[%s1448_s2 + $0x20] sm:$0xf]  ;;  %v373_v11 = vld [vmem:[%s1448_s2 + $0x18] sm:$0xff]  ;;  %v336_v12 = vld [vmem:[%s1447_s1 + $0x8] sm:$0xff]  ;;  %vm1185_vm1 = vmmov 0   ;;  %vm412_vm2 = vcmask 293888  }
  0x28   : > { %362 = vperm.xlu0 %1156, %v339_v6   ;;  %357 = vperm.xlu1 %1157, %v338_v7   ;;  %v372_v14 = vld [vmem:[%s1448_s2 + $0x10] sm:$0xff]  ;;  %v335_v15 = vld [vmem:[%s1447_s1] sm:$0xff]  ;;  %v371_v16 = vld [vmem:[%s1448_s2 + $0x8] sm:$0xff]  ;;  %vm416_vm3 = vcmask 1043456   ;;  %vm923_vm4 = vcmask 7168  }
  0x29   : > { %1048 = vmatprep.subr.mxu0 %v1184_v13  ;;  %1061 = vmatprep.subr.mxu1 %v1184_v13  ;;  %v370_v17 = vld [vmem:[%s1448_s2] sm:$0xff]  ;;  %v332_v33 = vld [vmem:[%s1272_s23 + $0x10] sm:$0xff]  ;;  %v331_v41 = vld [vmem:[%s1272_s23 + $0x8] sm:$0xff] }
  0x2a   : > { %v406_v18 = vld [vmem:[%s1450_s4] sm:$0xff]  ;;  %1058 = vmatprep.mubr.msk.f32.mxu0 %vm1185_vm1, %v1184_v13  ;;  %1071 = vmatprep.mubr.msk.f32.mxu1 %vm1185_vm1, %v1184_v13 }
  0x2b   : > { %v405_v19 = vld [vmem:[%s1449_s3] sm:$0xff] }
  0x2c   : > { %397 = vperm.xlu0 %1156, %v374_v9   ;;  %352 = vperm.xlu1 %1157, %v337_v10   ;;  %v334_v21 = vld [vmem:[%s1272_s23 + $0x20] sm:$0xf]  ;;  %v414_v23 = vsel %vm412_vm2, %v405_v19, 0  ;;  %v333_v25 = vld [vmem:[%s1272_s23 + $0x18] sm:$0xff] }
  0x2d   : > { %v1325_v28 = vand.u32 4294901760, %v414_v23  ;;  %v330_v44 = vld [vmem:[%s1272_s23] sm:$0xff] }
  0x2f   : > { %v1331_v36 = vsub.f32 %v414_v23, %v1325_v28 }
  0x30   : > { %392 = vperm.xlu0 %1156, %v373_v11   ;;  %347 = vperm.xlu1 %1157, %v336_v12  }
  0x31   : > { %v492_v46 = vand.u32 4294901760, %v1331_v36 }
  0x33   : > { %v493_v57 = vsub.f32 %v1331_v36, %v492_v46 }
  0x34   : > { %387 = vperm.xlu0 %1156, %v372_v14   ;;  %342 = vperm.xlu1 %1157, %v335_v15  }
  0x35   : > { %v494_v2 = vand.u32 4294901760, %v493_v57 }
  0x38   : > { %382 = vperm.xlu0 %1156, %v371_v16   ;;  %377 = vperm.xlu1 %1157, %v370_v17  }
  0x3c   : > { %409 = vperm.xlu0 %1156, %v406_v18  }
  0xa3   : > { %v363_v20 = vpop.permute.xlu0 %362  ;;  %v358_v22 = vpop.permute.xlu1 %357 }
  0xa4   : > { %v369_v24 = vmul.f32 %v363_v20, %v334_v21  ;;  %v368_v30 = vmul.f32 %v358_v22, %v333_v25 }
  0xa7   : > { %v398_v26 = vpop.permute.xlu0 %397  ;;  %v353_v27 = vpop.permute.xlu1 %352 }
  0xa8   : > { %v404_v29 = vadd.f32 %v398_v26, %v369_v24  ;;  %v367_v39 = vmul.f32 %v353_v27, %v332_v33  ;;  %v919_v33 = vld [vmem:[%s1452_s6] sm:$0xff] }
  0xaa   : > { %v418_v31 = vsel %vm416_vm3, %v404_v29, 0 }
  0xab   : > { %v1327_v32 = vand.u32 4294901760, %v418_v31  ;;  %v393_v34 = vpop.permute.xlu0 %392  ;;  %v348_v35 = vpop.permute.xlu1 %347 }
  0xac   : > { %v403_v37 = vadd.f32 %v393_v34, %v368_v30  ;;  %v366_v50 = vmul.f32 %v348_v35, %v331_v41  ;;  %v925_v35 = vld [vmem:[%s1453_s7] sm:$0xff] }
  0xad   : > { %v1334_v38 = vsub.f32 %v418_v31, %v1327_v32  ;;  %1049 = vmatpush3.msra.mxu0 %v1327_v32 }
  0xae   : > { %v1337_v40 = vand.u32 4294901760, %v403_v37  ;;  %1050 = vmatprep.subr.mxu0 %v1184_v13 }
  0xaf   : > { %v388_v42 = vpop.permute.xlu0 %387  ;;  %v343_v43 = vpop.permute.xlu1 %342  ;;  %v525_v45 = vand.u32 4294901760, %v1334_v38 }
  0xb0   : > { %v1345_v47 = vsub.f32 %v403_v37, %v1337_v40  ;;  %v402_v48 = vadd.f32 %v388_v42, %v367_v39  ;;  %1051 = vmatpush3.msra.mxu0 %v1337_v40  ;;  %v365_v52 = vmul.f32 %v343_v43, %v330_v44 }
  0xb1   : > { %1052 = vmatprep.subr.mxu0 %v1184_v13  ;;  %v526_v49 = vsub.f32 %v1334_v38, %v525_v45 }
  0xb2   : > { %v1352_v51 = vand.u32 4294901760, %v402_v48  ;;  %v532_v53 = vand.u32 4294901760, %v1345_v47 }
  0xb3   : > { %v383_v54 = vpop.permute.xlu0 %382  ;;  %v378_v55 = vpop.permute.xlu1 %377  ;;  %v527_v56 = vand.u32 4294901760, %v526_v49 }
  0xb4   : > { %v538_v58 = vsub.f32 %v402_v48, %v1352_v51  ;;  %v401_v59 = vadd.f32 %v383_v54, %v366_v50  ;;  %v400_v60 = vadd.f32 %v378_v55, %v365_v52  ;;  %1053 = vmatpush3.msra.mxu0 %v1352_v51  ;;  %v533_v61 = vsub.f32 %v1345_v47, %v532_v53 }
  0xb5   : > { %1062 = vmatpush3.msra.mxu1 %v527_v56  ;;  %1054 = vmatprep.subr.mxu0 %v1184_v13 }
  0xb6   : > { %v1362_v62 = vand.u32 4294901760, %v401_v59  ;;  %v1364_v63 = vand.u32 4294901760, %v400_v60  ;;  %1063 = vmatprep.subr.mxu1 %v1184_v13  ;;  %v534_v0 = vand.u32 4294901760, %v533_v61  ;;  %v539_v1 = vand.u32 4294901760, %v538_v58 }
  0xb7   : > { %v410_v20 = vpop.permute.xlu0 %409 }
  0xb8   : > { %v545_v3 = vsub.f32 %v401_v59, %v1362_v62  ;;  %v552_v4 = vsub.f32 %v400_v60, %v1364_v63  ;;  %1055 = vmatpush3.msra.mxu0 %v1362_v62  ;;  %1064 = vmatpush3.msra.mxu1 %v534_v0  ;;  %v540_v5 = vsub.f32 %v538_v58, %v539_v1 }
  0xb9   : > { %1056 = vmatprep.subr.mxu0 %v1184_v13  ;;  %1065 = vmatprep.subr.mxu1 %v1184_v13 }
  0xba   : > { %1057 = vmatpush3.msra.mxu0 %v1364_v63  ;;  %v541_v6 = vand.u32 4294901760, %v540_v5  ;;  %v546_v7 = vand.u32 4294901760, %v545_v3  ;;  %v553_v8 = vand.u32 4294901760, %v552_v4 }
  0xbb   : > { %1059 = vmatmul.mubr.f32.vlgmr.msra.gmra.mxu0 %v494_v2  ;;  %1074 = vmatprep.subr.mxu0 %v1184_v13 }
  0xbc   : > { %1066 = vmatpush3.msra.mxu1 %v541_v6  ;;  %1075 = vmatpush3.msra.mxu0 %v1334_v38  ;;  %v547_v9 = vsub.f32 %v545_v3, %v546_v7  ;;  %v554_v10 = vsub.f32 %v552_v4, %v553_v8 }
  0xbd   : > { %1076 = vmatprep.subr.mxu0 %v1184_v13  ;;  %1067 = vmatprep.subr.mxu1 %v1184_v13 }
  0xbe   : > { %1077 = vmatpush3.msra.mxu0 %v1345_v47  ;;  %v548_v11 = vand.u32 4294901760, %v547_v9  ;;  %1084 = vmatprep.mubr.msk.f32.mxu0 %vm1185_vm1, %v1184_v13  ;;  %v555_v12 = vand.u32 4294901760, %v554_v10 }
  0xbf   : > { %1078 = vmatprep.subr.mxu0 %v1184_v13 }
  0xc0   : > { %1068 = vmatpush3.msra.mxu1 %v548_v11  ;;  %1079 = vmatpush3.msra.mxu0 %v538_v58 }
  0xc1   : > { %1069 = vmatprep.subr.mxu1 %v1184_v13  ;;  %1080 = vmatprep.subr.mxu0 %v1184_v13 }
  0xc2   : > { %1070 = vmatpush3.msra.mxu1 %v555_v12  ;;  %1081 = vmatpush3.msra.mxu0 %v545_v3 }
  0xc3   : > { %1072 = vmatmul.mubr.f32.vlgmr.msra.gmra.mxu1 %v1325_v28  ;;  %1082 = vmatprep.subr.mxu0 %v1184_v13 }
  0xc4   : > { %1087 = vmatprep.subr.mxu1 %v1184_v13  ;;  %1083 = vmatpush3.msra.mxu0 %v552_v4 }
  0xc5   : > { %1088 = vmatpush3.msra.mxu1 %v1327_v32  ;;  %1085 = vmatmul.mubr.f32.vlgmr.msra.gmra.mxu0 %v1331_v36 }
  0xc6   : > { %1089 = vmatprep.subr.mxu1 %v1184_v13  ;;  %1100 = vmatprep.subr.mxu0 %v1184_v13 }
  0xc7   : > { %1090 = vmatpush3.msra.mxu1 %v1337_v40  ;;  %1101 = vmatpush3.msra.mxu0 %v525_v45 }
  0xc8   : > { %1091 = vmatprep.subr.mxu1 %v1184_v13  ;;  %1102 = vmatprep.subr.mxu0 %v1184_v13 }
  0xc9   : > { %1092 = vmatpush3.msra.mxu1 %v1352_v51  ;;  %1103 = vmatpush3.msra.mxu0 %v532_v53 }
  0xca   : > { %1093 = vmatprep.subr.mxu1 %v1184_v13  ;;  %1104 = vmatprep.subr.mxu0 %v1184_v13 }
  0xcb   : > { %1094 = vmatpush3.msra.mxu1 %v1362_v62  ;;  %1105 = vmatpush3.msra.mxu0 %v539_v1 }
  0xcc   : > { %1095 = vmatprep.subr.mxu1 %v1184_v13  ;;  %1106 = vmatprep.subr.mxu0 %v1184_v13 }
  0xcd   : > { %1096 = vmatpush3.msra.mxu1 %v1364_v63  ;;  %1097 = vmatprep.mubr.msk.f32.mxu1 %vm1185_vm1, %v1184_v13 }
  0xce   : > { %1107 = vmatpush3.msra.mxu0 %v546_v7  ;;  %1098 = vmatmul.mubr.f32.vlgmr.msra.gmra.mxu1 %v492_v46 }
  0xcf   : > { %1108 = vmatprep.subr.mxu0 %v1184_v13  ;;  %1113 = vmatprep.subr.mxu1 %v1184_v13 }
  0xd0   : > { %1109 = vmatpush3.msra.mxu0 %v553_v8  ;;  %1110 = vmatprep.mubr.msk.f32.mxu0 %vm1185_vm1, %v1184_v13 }
  0xd1   : > { %1114 = vmatpush3.msra.mxu1 %v1327_v32  ;;  %1111 = vmatmul.mubr.f32.vlgmr.msra.gmra.mxu0 %v1325_v28 }
  0xd2   : > { %1115 = vmatprep.subr.mxu1 %v1184_v13  ;;  %1123 = vmatprep.mubr.msk.f32.mxu1 %vm1185_vm1, %v1184_v13 }
  0xd3   : > { %1116 = vmatpush3.msra.mxu1 %v1337_v40 }
  0xd4   : > { %1117 = vmatprep.subr.mxu1 %v1184_v13 }
  0xd5   : > { %1118 = vmatpush3.msra.mxu1 %v1352_v51 }
  0xd6   : > { %1119 = vmatprep.subr.mxu1 %v1184_v13 }
  0xd7   : > { %1120 = vmatpush3.msra.mxu1 %v1362_v62 }
  0xd8   : > { %1121 = vmatprep.subr.mxu1 %v1184_v13 }
  0xd9   : > { %1122 = vmatpush3.msra.mxu1 %v1364_v63 }
  0xda   : > { %1124 = vmatmul.mubr.f32.vlgmr.msra.gmra.mxu1 %v1325_v28 }
 0x17b   : > { %v496_v14 = vpop.f32.mrf.mxu0 }
 0x17c   : > { %v497_v21 = vadd.f32 %v496_v14, %v410_v20 }
 0x17d   : > { %v1060_v15 = vpop.f32.mrf.mxu0 }
 0x183   : > { %v592_v16 = vpop.f32.mrf.mxu1 }
 0x184   : > { %v593_v23 = vadd.f32 %v592_v16, %v497_v21 }
 0x185   : > { %v1073_v17 = vpop.f32.mrf.mxu1  ;;  %v674_v18 = vpop.f32.mrf.mxu0 }
 0x186   : > { %v675_v26 = vadd.f32 %v674_v18, %v593_v23 }
 0x187   : > { %v1086_v19 = vpop.f32.mrf.mxu0 }
 0x18e   : > { %v752_v22 = vpop.f32.mrf.mxu1 }
 0x18f   : > { %v753_v13 = vadd.f32 %v752_v22, %v675_v26 }
 0x190   : > { %v1099_v24 = vpop.f32.mrf.mxu1 }
 0x191   : > { %v838_v25 = vpop.f32.mrf.mxu0 }
 0x192   : > { %v839_v29 = vadd.f32 %v838_v25, %v753_v13 }
 0x193   : > { %v1112_v27 = vpop.f32.mrf.mxu0 }
 0x19a   : > { %v914_v30 = vpop.f32.mrf.mxu1 }
 0x19b   : > { %v915_v31 = vadd.f32 %v914_v30, %v839_v29 }
 0x19c   : > { %v1125_v28 = vpop.f32.mrf.mxu1 }
 0x19d   : > { %918 = vst [vmem:[%s1270_s22] sm:$0xff] %v915_v31  ;;  %920 = vadd.xlane.f32.xlu1 %v915_v31  ;;  %v926_v32 = vmul.f32 %v915_v31, %v915_v31 }
 0x19f   : > { %927 = vadd.xlane.f32.xlu0 %v926_v32 }
 0x226   : > { %v921_v34 = vpop.xlane.xlu1 %920 }
 0x227   : > { %v922_v36 = vadd.f32 %v921_v34, %v919_v33 }
 0x228   : > { %v928_v37 = vpop.xlane.xlu0 %927 }
 0x229   : > { %924 = vst.msk [vmem:[%s1452_s6] sm:$0xff] %vm923_vm4, %v922_v36  ;;  %v929_v38 = vadd.f32 %v928_v37, %v925_v35 }
 0x22b   : > { %930 = vst.msk [vmem:[%s1453_s7] sm:$0xff] %vm923_vm4, %v929_v38 }
 0x22c PF: > { %p15_p10 = scmp.ge.s32.totalorder %s1245_s28, 6   ;;  %s1454_s24 = smov %s1176_s25 }
 0x22d   : > { %s1455_s25 = smov %s1254_s8  ;;  %s1456_s26 = smov %s1245_s28 }
 0x22e   :  { %17 = sbr.rel (!%p15_p10) target bundleno = 2 (0x2), region = 133 }

// kernel: _lambda_.11
= control target key start
LH: loop header
LB: loop body
LE: loop exit
PB: predicated region body
PF: predicated region fallthrough
CT: control target
= control target key end

     0   :  { %s969_s24 = smov 0   ;;  %s1037_s0 = inlined_call_operand.vmem [shape: f32[8,512], index: 0, kind: input, shape index: {}]   ;;  %s1038_s1 = inlined_call_operand.vmem [shape: f32[8,1], index: 1, kind: input, shape index: {}]   ;;  %s1039_s2 = inlined_call_operand.vmem [shape: f32[8,1], index: 2, kind: input, shape index: {}]   ;;  %s1040_s3 = inlined_call_operand.vmem [shape: f32[4,8], index: 3, kind: input, shape index: {}]   ;;  %s1041_s4 = inlined_call_operand.vmem [shape: f32[4,1], index: 4, kind: input, shape index: {}]   ;;  %s1042_s5 = inlined_call_operand.vmem [shape: f32[4,512], index: 5, kind: output, shape index: {0}]   ;;  %s1043_s6 = inlined_call_operand.vmem [shape: f32[4,1], index: 6, kind: output, shape index: {1}]   ;;  %s1044_s7 = inlined_call_operand.vmem [shape: f32[4,1], index: 7, kind: output, shape index: {2}]  }
   0x1 LB: > { %s845_s25 = sadd.s32 4294967295, %s923_s24   ;;  %p849_p0 = scmp.ge.s32.totalorder %s923_s24, 1  ;;  %s923_s24 = sphi %s969_s24, %s18_s24  }
   0x2   : > { %p231_p1 = scmp.lt.s32.totalorder %s923_s24, 5 }
   0x4   : > { %p232_p2 = pnand %p849_p0, %p231_p1 }
   0x5   : > { %p261_p3 = scmp.lt.s32.totalorder (!%p232_p2), %s845_s25, 3  ;;  %p852_p4 = scmp.ne.s32.totalorder (!%p232_p2), %s845_s25, 0 }
   0x6   : > { %235 = sbr.rel (%p232_p2) target bundleno = 563 (0x233), region = 40 }
   0xb   : > { %s262_s26 = scalar_select %p261_p3, %s845_s25, 3 }
   0xc   : > { %272 = sbr.rel (%p852_p4) target bundleno = 19 (0x13), region = 44 }
   0xd   : > { %s850_s27 = sshll.u32 %s262_s26, 3  ;;  %s851_s28 = sshll.u32 %s262_s26, 2 }
   0xe   : > { %s264_s8 = scalar_lea.vmem %s1037_s0, %s850_s27  ;;  %s983_s11 = scalar_lea.vmem %s1042_s5, %s851_s28 }
  0x11   : > { %vm273_vm0 = vcmask 3072   ;;  %v925_v0 = vmov 0.0  }
  0x12   : > { %274 = vst.msk [vmem:[%s1043_s6] sm:$0xf] %vm273_vm0, %v925_v0  ;;  %275 = vst.msk [vmem:[%s1044_s7] sm:$0xf] %vm273_vm0, %v925_v0 }
  0x13 PF: > { %v277_v1 = vld [vmem:[%s1038_s1] sm:$0xff]  ;;  %v926_v2 = vmov 0   ;;  %v927_v4 = vmov 0.0   ;;  %vm928_vm1 = vmmov 0   ;;  %vm314_vm2 = vcmask 64512  }
  0x14   : > { %909 = vset.pattern.permute.xlu0 %v926_v2  ;;  %910 = vset.pattern.permute.xlu1 %v926_v2  ;;  %v284_v3 = vld [vmem:[%s1039_s2] sm:$0xff]  ;;  %vm766_vm5 = vcmask 1043456   ;;  %vm771_vm6 = vcmask 3072  }
  0x15   : > { %280 = vperm.xlu0 %909, %v277_v1   ;;  %867 = vmatprep.subr.mxu0 %v927_v4  ;;  %v308_v5 = vld [vmem:[%s1041_s4] sm:$0xf] }
  0x16   : > { %872 = vmatprep.subr.mxu1 %v927_v4  ;;  %869 = vmatprep.mubr.msk.f32.mxu0 %vm928_vm1, %v927_v4  ;;  %v276_v7 = vld [vmem:[%s264_s8] sm:$0xff] }
  0x17   : > { %874 = vmatprep.mubr.msk.f32.mxu1 %vm928_vm1, %v927_v4  ;;  %311 = vperm.xlu1 %910, %v308_v5   ;;  %v307_v18 = vld [vmem:[%s1040_s3] sm:$0xf] }
  0x18   : > { %v316_v22 = vsel %vm314_vm2, %v307_v18, 0 }
  0x19   : > { %287 = vperm.xlu0 %909, %v284_v3   ;;  %v384_v25 = vand.u32 4294901760, %v316_v22  ;;  %v765_v59 = vld [vmem:[%s1043_s6] sm:$0xf] }
  0x1a   : > { %v773_v61 = vld [vmem:[%s1044_s7] sm:$0xf] }
  0x1b   : > { %v385_v26 = vsub.f32 %v316_v22, %v384_v25 }
  0x1d   : > { %v386_v27 = vand.u32 4294901760, %v385_v26 }
  0x1f   : > { %v387_v28 = vsub.f32 %v385_v26, %v386_v27 }
  0x21   : > { %v388_v31 = vand.u32 4294901760, %v387_v28 }
  0x90   : > { %v281_v6 = vpop.permute.xlu0 %280 }
  0x91   : > { %v283_v8 = vmul.f32 %v281_v6, %v276_v7 }
  0x92   : > { %v312_v38 = vpop.permute.xlu1 %311 }
  0x94   : > { %v288_v9 = vpop.permute.xlu0 %287 }
  0x95   : > { %v290_v10 = vadd.f32 %v288_v9, %v283_v8 }
  0x97   : > { %v292_v11 = vmin.f32 %v290_v10, 20.0  ;;  %vm291_vm4 = vcmp.gt.f32.partialorder %v290_v10, 20.0 }
  0x99   : > { %v293_v12 = vmul.f32 1.442695, %v292_v11 }
  0x9b   : > { %911 = vpow2.f32 %v293_v12 }
  0xa8   : > { %v912_v13 = vpop.eup %911 }
  0xa9   : > { %v295_v14 = vadd.f32 1.0, %v912_v13  ;;  %v298_v15 = vmul.f32 -0.5, %v912_v13  ;;  %v301_v17 = vand.u32 2147483647, %v912_v13 }
  0xab   : > { %913 = vlog2.f32 %v295_v14  ;;  %v299_v16 = vadd.f32 1.0, %v298_v15  ;;  %vm302_vm3 = vcmp.lt.f32.partialorder %v301_v17, 0.0004427343 }
  0xad   : > { %v300_v21 = vmul.f32 %v912_v13, %v299_v16 }
  0xb8   : > { %v914_v19 = vpop.eup %913 }
  0xb9   : > { %v297_v20 = vmul.f32 0.6931472, %v914_v19 }
  0xbb   : > { %v303_v23 = vsel %vm302_vm3, %v300_v21, %v297_v20 }
  0xbc   : > { %v304_v24 = vsel %vm291_vm4, %v290_v10, %v303_v23 }
  0xbd   : > { %915 = vtanh.f32 %v304_v24 }
  0xca   : > { %v916_v29 = vpop.eup %915 }
  0xcb   : > { %v306_v30 = vmul.f32 %v916_v29, %v290_v10 }
  0xcd   : > { %v349_v32 = vand.u32 4294901760, %v306_v30 }
  0xcf   : > { %868 = vmatpush3.msra.mxu0 %v349_v32  ;;  %v426_v33 = vsub.f32 %v306_v30, %v349_v32 }
  0xd0   : > { %870 = vmatmul.mubr.f32.vlgmr.msra.gmra.mxu0 %v388_v31  ;;  %877 = vmatprep.subr.mxu0 %v927_v4 }
  0xd1   : > { %878 = vmatpush3.msra.mxu0 %v426_v33  ;;  %879 = vmatprep.mubr.msk.f32.mxu0 %vm928_vm1, %v927_v4  ;;  %v427_v34 = vand.u32 4294901760, %v426_v33 }
  0xd2   : > { %887 = vmatprep.subr.mxu0 %v927_v4 }
  0xd3   : > { %v428_v35 = vsub.f32 %v426_v33, %v427_v34 }
  0xd4   : > { %880 = vmatmul.mubr.f32.vlgmr.msra.gmra.mxu0 %v385_v26 }
  0xd5   : > { %888 = vmatpush3.msra.mxu0 %v427_v34  ;;  %v429_v36 = vand.u32 4294901760, %v428_v35  ;;  %889 = vmatprep.mubr.msk.f32.mxu0 %vm928_vm1, %v927_v4 }
  0xd7   : > { %873 = vmatpush3.msra.mxu1 %v429_v36 }
  0xd8   : > { %875 = vmatmul.mubr.f32.vlgmr.msra.gmra.mxu1 %v384_v25  ;;  %882 = vmatprep.subr.mxu1 %v927_v4 }
  0xd9   : > { %883 = vmatpush3.msra.mxu1 %v349_v32  ;;  %884 = vmatprep.mubr.msk.f32.mxu1 %vm928_vm1, %v927_v4 }
  0xda   : > { %892 = vmatprep.subr.mxu1 %v927_v4  ;;  %890 = vmatmul.mubr.f32.vlgmr.msra.gmra.mxu0 %v384_v25 }
  0xdc   : > { %885 = vmatmul.mubr.f32.vlgmr.msra.gmra.mxu1 %v386_v27 }
  0xdd   : > { %893 = vmatpush3.msra.mxu1 %v349_v32  ;;  %894 = vmatprep.mubr.msk.f32.mxu1 %vm928_vm1, %v927_v4 }
  0xe0   : > { %895 = vmatmul.mubr.f32.vlgmr.msra.gmra.mxu1 %v384_v25 }
 0x190   : > { %v390_v37 = vpop.f32.mrf.mxu0 }
 0x191   : > { %v391_v41 = vadd.f32 %v390_v37, %v312_v38 }
 0x192   : > { %v871_v39 = vpop.f32.mrf.mxu0 }
 0x194   : > { %v540_v40 = vpop.f32.mrf.mxu0 }
 0x196   : > { %v881_v42 = vpop.f32.mrf.mxu0 }
 0x198   : > { %v466_v43 = vpop.f32.mrf.mxu1 }
 0x199   : > { %v467_v44 = vadd.f32 %v466_v43, %v391_v41 }
 0x19a   : > { %v876_v45 = vpop.f32.mrf.mxu1  ;;  %v688_v46 = vpop.f32.mrf.mxu0 }
 0x19b   : > { %v541_v47 = vadd.f32 %v540_v40, %v467_v44 }
 0x19c   : > { %v614_v48 = vpop.f32.mrf.mxu1  ;;  %v891_v49 = vpop.f32.mrf.mxu0 }
 0x19d   : > { %v615_v50 = vadd.f32 %v614_v48, %v541_v47 }
 0x19e   : > { %v886_v51 = vpop.f32.mrf.mxu1 }
 0x19f   : > { %v689_v52 = vadd.f32 %v688_v46, %v615_v50 }
 0x1a0   : > { %v760_v53 = vpop.f32.mrf.mxu1 }
 0x1a1   : > { %v761_v54 = vadd.f32 %v760_v53, %v689_v52 }
 0x1a2   : > { %v896_v55 = vpop.f32.mrf.mxu1 }
 0x1a3   : > { %764 = vst [vmem:[%s983_s11] sm:$0xf] %v761_v54  ;;  %v767_v56 = vsel %vm766_vm5, %v761_v54, 0.0  ;;  %v774_v57 = vmul.f32 %v761_v54, %v761_v54 }
 0x1a4   : > { %768 = vadd.xlane.f32.xlu1 %v767_v56 }
 0x1a5   : > { %v775_v58 = vsel %vm766_vm5, %v774_v57, 0.0 }
 0x1a6   : > { %776 = vadd.xlane.f32.xlu0 %v775_v58 }
 0x22d   : > { %v769_v60 = vpop.xlane.xlu1 %768 }
 0x22e   : > { %v770_v62 = vadd.f32 %v769_v60, %v765_v59 }
 0x22f   : > { %v777_v63 = vpop.xlane.xlu0 %776 }
 0x230   : > { %772 = vst.msk [vmem:[%s1043_s6] sm:$0xf] %vm771_vm6, %v770_v62  ;;  %v778_v0 = vadd.f32 %v777_v63, %v773_v61 }
 0x232   : > { %779 = vst.msk [vmem:[%s1044_s7] sm:$0xf] %vm771_vm6, %v778_v0 }
 0x233 PF: > { %s18_s24 = sadd.s32 1, %s923_s24  }
 0x234   : > { %p15_p5 = scmp.ge.s32.totalorder %s18_s24, 6  }
 0x236   :  { %17 = sbr.rel (!%p15_p5) target bundleno = 1 (0x1), region = 90 }

</bundles_post_ra>
